<compile_context>
chip_gen: v5e
topology: v5e:2x2
jax: 0.10.0
libtpu: 0.0.40
codegen_flags: <defaults>
</compile_context>

<pallas_src>
import functools
import math

import jax
import jax.numpy as jnp
from jax.experimental import pallas as pl
from jax.experimental.pallas import tpu as pltpu

# ------------------- small synthetic BERT config -------------------
VOCAB = 32
MAX_POS = 16
HIDDEN = 32
N_LAYERS = 2
N_HEADS = 4
HEAD_DIM = HIDDEN // N_HEADS
INTERMEDIATE = 64
LN_EPS = 1e-12

# synthetic stand-in for BertTokenizer.get_vocab()
BERT_VOCAB = {'[PAD]': 0, '[UNK]': 1, '[CLS]': 2, '[SEP]': 3,
              'i': 4, 'love': 5, 'you': 6, 'hello': 7, 'world': 8, 'today': 9}
PAD_ID = BERT_VOCAB['[PAD]']
UNK_ID = BERT_VOCAB['[UNK]']


# --------------------- in-kernel math helpers ----------------------

def _layernorm(x, g, b, eps):
    mean = jnp.mean(x, axis=-1, keepdims=True)
    var = jnp.mean(jnp.square(x - mean), axis=-1, keepdims=True)
    return (x - mean) * jax.lax.rsqrt(var + eps) * g + b


def _gelu_tanh(x):
    # TODO(synk): HF BERT uses exact (erf) GELU; tanh approximation kept for
    # Mosaic-safe lowering (numerically ~1e-3 close).
    c = math.sqrt(2.0 / math.pi)
    return 0.5 * x * (1.0 + jnp.tanh(c * (x + 0.044715 * x * x * x)))


# ------------------------- Pallas kernels --------------------------

def _embed_ln_kernel(x_ref, pos_ref, type_ref, g_ref, b_ref, o_ref, *, eps):
    # fuse pos / token-type embedding adds with the embedding LayerNorm (no zeros residual)
    x = x_ref[0] + pos_ref[...] + type_ref[...]                     # (S, D)
    o_ref[0] = _layernorm(x, g_ref[...], b_ref[...], eps).astype(o_ref.dtype)


def embed_layernorm(x3d, pos, type_row, gamma, beta):
    B, S, D = x3d.shape
    return pl.pallas_call(
        functools.partial(_embed_ln_kernel, eps=LN_EPS),
        out_shape=jax.ShapeDtypeStruct((B, S, D), jnp.float32),
        grid=(B,),
        in_specs=[
            pl.BlockSpec((1, S, D), lambda b: (b, 0, 0)),
            pl.BlockSpec((S, D), lambda b: (0, 0)),
            pl.BlockSpec((1, D), lambda b: (0, 0)),
            pl.BlockSpec((1, D), lambda b: (0, 0)),
            pl.BlockSpec((1, D), lambda b: (0, 0)),
        ],
        out_specs=pl.BlockSpec((1, S, D), lambda b: (b, 0, 0)),
        compiler_params=pltpu.CompilerParams(dimension_semantics=("parallel",)),
    )(x3d, pos, type_row, gamma, beta)


def _bert_layer_kernel(x_ref, ids_ref, wqkv_ref, bqkv_ref, wo_ref, bo_ref,
                       ln1g_ref, ln1b_ref, w1_ref, b1_ref, w2_ref, b2_ref,
                       ln2g_ref, ln2b_ref, o_ref, *, scale, eps):
    x = x_ref[0]                                                    # (S, D)

    # fused QKV projection: one (S, D) @ (D, 3D) MXU pass
    qkv = jnp.dot(x, wqkv_ref[...], preferred_element_type=jnp.float32) + bqkv_ref[...]

    # additive padding-mask bias computed in-kernel from int32 ids (HF: (ids != PAD))
    bias = jnp.where(ids_ref[0] == PAD_ID, -1e9, 0.0).astype(jnp.float32)   # (1, S)

    # all-head attention; per-head context is folded straight into the output projection
    # (concat_h(ctx_h) @ Wo == sum_h ctx_h @ Wo[h*dh:(h+1)*dh, :]) so the result stays
    # a lane-dense (S, D) slab with no head transposes.
    attn_out = jnp.zeros_like(x) + bo_ref[...]
    for h in range(N_HEADS):
        lo = h * HEAD_DIM
        qh = qkv[:, lo:lo + HEAD_DIM]
        kh = qkv[:, HIDDEN + lo:HIDDEN + lo + HEAD_DIM]
        vh = qkv[:, 2 * HIDDEN + lo:2 * HIDDEN + lo + HEAD_DIM]
        s = jnp.dot(qh, kh.T, preferred_element_type=jnp.float32) * scale + bias
        s = s - jnp.max(s, axis=-1, keepdims=True)
        p = jnp.exp(s)
        p = p * pl.reciprocal(jnp.sum(p, axis=-1, keepdims=True), approx=True)
        ctx_h = jnp.dot(p, vh, preferred_element_type=jnp.float32)            # (S, dh)
        attn_out = attn_out + jnp.dot(ctx_h, wo_ref[lo:lo + HEAD_DIM, :],
                                      preferred_element_type=jnp.float32)

    # residual + LN1
    x1 = _layernorm(x + attn_out, ln1g_ref[...], ln1b_ref[...], eps)

    # FFN (GELU) + residual + LN2
    ff = jnp.dot(x1, w1_ref[...], preferred_element_type=jnp.float32) + b1_ref[...]
    ff = _gelu_tanh(ff)
    ff = jnp.dot(ff, w2_ref[...], preferred_element_type=jnp.float32) + b2_ref[...]

    o_ref[0] = _layernorm(x1 + ff, ln2g_ref[...], ln2b_ref[...], eps).astype(o_ref.dtype)


def bert_layer(x3d, ids3d, lp):
    B, S, D = x3d.shape
    bcast = lambda b: (0, 0)        # weights: same full block every grid step
    return pl.pallas_call(
        functools.partial(_bert_layer_kernel,
                          scale=1.0 / math.sqrt(HEAD_DIM), eps=LN_EPS),
        out_shape=jax.ShapeDtypeStruct((B, S, D), jnp.float32),
        grid=(B,),
        in_specs=[
            pl.BlockSpec((1, S, D), lambda b: (b, 0, 0)),           # x
            pl.BlockSpec((1, 1, S), lambda b: (b, 0, 0)),           # ids (int32)
            pl.BlockSpec((D, 3 * D), bcast),                        # wqkv (fused)
            pl.BlockSpec((1, 3 * D), bcast),                        # bqkv
            pl.BlockSpec((D, D), bcast),                            # wo
            pl.BlockSpec((1, D), bcast),                            # bo
            pl.BlockSpec((1, D), bcast),                            # ln1 gamma
            pl.BlockSpec((1, D), bcast),                            # ln1 beta
            pl.BlockSpec((D, INTERMEDIATE), bcast),                 # w1
            pl.BlockSpec((1, INTERMEDIATE), bcast),                 # b1
            pl.BlockSpec((INTERMEDIATE, D), bcast),                 # w2
            pl.BlockSpec((1, D), bcast),                            # b2
            pl.BlockSpec((1, D), bcast),                            # ln2 gamma
            pl.BlockSpec((1, D), bcast),                            # ln2 beta
        ],
        out_specs=pl.BlockSpec((1, S, D), lambda b: (b, 0, 0)),
        compiler_params=pltpu.CompilerParams(dimension_semantics=("parallel",)),
    )(x3d, ids3d, lp['wqkv'], lp['bqkv'], lp['wo'], lp['bo'],
      lp['ln1_g'], lp['ln1_b'], lp['w1'], lp['b1'], lp['w2'], lp['b2'],
      lp['ln2_g'], lp['ln2_b'])


# ---------------------- parameters & forward -----------------------

def init_params(seed=0):
    key = jax.random.PRNGKey(seed)

    def nxt():
        nonlocal key
        key, sub = jax.random.split(key)
        return sub

    def dense(shape):
        return 0.02 * jax.random.normal(nxt(), shape, dtype=jnp.float32)

    params = {
        'word_emb': dense((VOCAB, HIDDEN)),
        'pos_emb': dense((MAX_POS, HIDDEN)),
        'type_emb': dense((2, HIDDEN)),
        'emb_ln_g': jnp.ones((1, HIDDEN), jnp.float32),
        'emb_ln_b': jnp.zeros((1, HIDDEN), jnp.float32),
        'layers': [],
    }
    for _ in range(N_LAYERS):
        params['layers'].append({
            # Q|K|V projection weights stored pre-fused: (D, 3D)
            'wqkv': dense((HIDDEN, 3 * HIDDEN)),
            'bqkv': jnp.zeros((1, 3 * HIDDEN), jnp.float32),
            'wo': dense((HIDDEN, HIDDEN)), 'bo': jnp.zeros((1, HIDDEN), jnp.float32),
            'ln1_g': jnp.ones((1, HIDDEN), jnp.float32),
            'ln1_b': jnp.zeros((1, HIDDEN), jnp.float32),
            'w1': dense((HIDDEN, INTERMEDIATE)),
            'b1': jnp.zeros((1, INTERMEDIATE), jnp.float32),
            'w2': dense((INTERMEDIATE, HIDDEN)),
            'b2': jnp.zeros((1, HIDDEN), jnp.float32),
            'ln2_g': jnp.ones((1, HIDDEN), jnp.float32),
            'ln2_b': jnp.zeros((1, HIDDEN), jnp.float32),
        })
    return params


def tokenize(batch_of_sentences):
    """string tokens -> ids via vocab dict, unknown -> [UNK] (mirrors the torch module)."""
    return jnp.array(
        [[BERT_VOCAB.get(tok, UNK_ID) for tok in sent] for sent in batch_of_sentences],
        dtype=jnp.int32)


def bert_forward(params, ids):
    """Returns last hidden state: (bs, total_len, hidden)."""
    B, S = ids.shape
    # embedding-table gather is XLA glue; everything downstream runs in Pallas
    x = jnp.take(params['word_emb'], ids, axis=0)                       # (B, S, D)
    x = embed_layernorm(x, params['pos_emb'][:S], params['type_emb'][0:1],
                        params['emb_ln_g'], params['emb_ln_b'])

    ids3d = ids.reshape(B, 1, S)                                        # mask built in-kernel
    for lp in params['layers']:
        x = bert_layer(x, ids3d, lp)
    return x


if __name__ == "__main__":
    params = init_params(seed=0)   # deterministic synthetic weights (PRNGKey(0))

    # batch of pre-tokenized sentences with special tokens, as the module expects
    sentences = [
        ['[CLS]', 'i', 'love', 'you', '[SEP]', '[PAD]', '[PAD]', '[PAD]'],
        ['[CLS]', 'hello', 'world', 'moonbeam', 'today', '[SEP]', '[PAD]', '[PAD]'],
    ]
    ids = tokenize(sentences)                      # [2, 8] int32 ('moonbeam' -> [UNK])

    out = jax.jit(bert_forward)(params, ids)
    out = jax.block_until_ready(out)
    assert out.shape == (2, 8, HIDDEN) and out.dtype == jnp.float32
    assert bool(jnp.all(jnp.isfinite(out)))
    print("KERNEL_OK")
</pallas_src>

<mosaic_0001>
module attributes {stable_mosaic.version = 11 : i64} {
  func.func @_embed_ln_kernel(%arg0: i32, %arg1: memref<1x8x32xf32, #tpu.memory_space<vmem>>, %arg2: memref<8x32xf32, #tpu.memory_space<vmem>>, %arg3: memref<1x32xf32, #tpu.memory_space<vmem>>, %arg4: memref<1x32xf32, #tpu.memory_space<vmem>>, %arg5: memref<1x32xf32, #tpu.memory_space<vmem>>, %arg6: memref<1x8x32xf32, #tpu.memory_space<vmem>>) attributes {dimension_semantics = [#tpu.dimension_semantics<parallel>], iteration_bounds = array<i64: 2>, scalar_prefetch = 0 : i64, scratch_operands = 0 : i64, tpu.core_type = #tpu.core_type<tc>, window_params = [{transform_indices = @transform_0, window_bounds = array<i64: 1, 8, 32>}, {pipeline_mode = #tpu.pipeline_mode<synchronous>, transform_indices = @transform_1, window_bounds = array<i64: 8, 32>}, {pipeline_mode = #tpu.pipeline_mode<synchronous>, transform_indices = @transform_2, window_bounds = array<i64: 1, 32>}, {pipeline_mode = #tpu.pipeline_mode<synchronous>, transform_indices = @transform_3, window_bounds = array<i64: 1, 32>}, {pipeline_mode = #tpu.pipeline_mode<synchronous>, transform_indices = @transform_4, window_bounds = array<i64: 1, 32>}, {transform_indices = @transform_5, window_bounds = array<i64: 1, 8, 32>}]} {
    %c0 = arith.constant 0 : index
    %c0_0 = arith.constant 0 : index
    %c0_1 = arith.constant 0 : index
    %0 = vector.load %arg1[%c0, %c0_0, %c0_1] : memref<1x8x32xf32, #tpu.memory_space<vmem>>, vector<1x8x32xf32>
    %1 = vector.shape_cast %0 : vector<1x8x32xf32> to vector<8x32xf32>
    %c0_2 = arith.constant 0 : index
    %c0_3 = arith.constant 0 : index
    %2 = vector.load %arg2[%c0_2, %c0_3] : memref<8x32xf32, #tpu.memory_space<vmem>>, vector<8x32xf32>
    %3 = arith.addf %1, %2 : vector<8x32xf32>
    %c0_4 = arith.constant 0 : index
    %c0_5 = arith.constant 0 : index
    %4 = vector.load %arg3[%c0_4, %c0_5] : memref<1x32xf32, #tpu.memory_space<vmem>>, vector<1x32xf32>
    %5 = vector.broadcast %4 : vector<1x32xf32> to vector<8x32xf32>
    %6 = arith.addf %3, %5 : vector<8x32xf32>
    %c0_6 = arith.constant 0 : index
    %c0_7 = arith.constant 0 : index
    %7 = vector.load %arg4[%c0_6, %c0_7] : memref<1x32xf32, #tpu.memory_space<vmem>>, vector<1x32xf32>
    %c0_8 = arith.constant 0 : index
    %c0_9 = arith.constant 0 : index
    %8 = vector.load %arg5[%c0_8, %c0_9] : memref<1x32xf32, #tpu.memory_space<vmem>>, vector<1x32xf32>
    %cst = arith.constant dense<0.000000e+00> : vector<8xf32>
    %9 = vector.multi_reduction <add>, %6, %cst [1] : vector<8x32xf32> to vector<8xf32>
    %10 = vector.shape_cast %9 : vector<8xf32> to vector<8x1xf32>
    %cst_10 = arith.constant 3.200000e+01 : f32
    %11 = vector.broadcast %cst_10 : f32 to vector<8x1xf32>
    %12 = arith.divf %10, %11 : vector<8x1xf32>
    %13 = vector.broadcast %12 : vector<8x1xf32> to vector<8x32xf32>
    %14 = arith.subf %6, %13 : vector<8x32xf32>
    %15 = arith.mulf %14, %14 : vector<8x32xf32>
    %cst_11 = arith.constant dense<0.000000e+00> : vector<8xf32>
    %16 = vector.multi_reduction <add>, %15, %cst_11 [1] : vector<8x32xf32> to vector<8xf32>
    %17 = vector.shape_cast %16 : vector<8xf32> to vector<8x1xf32>
    %cst_12 = arith.constant 3.200000e+01 : f32
    %18 = vector.broadcast %cst_12 : f32 to vector<8x1xf32>
    %19 = arith.divf %17, %18 : vector<8x1xf32>
    %20 = vector.broadcast %12 : vector<8x1xf32> to vector<8x32xf32>
    %21 = arith.subf %6, %20 : vector<8x32xf32>
    %cst_13 = arith.constant 9.99999996E-13 : f32
    %22 = vector.broadcast %cst_13 : f32 to vector<8x1xf32>
    %23 = arith.addf %19, %22 : vector<8x1xf32>
    %24 = math.rsqrt %23 : vector<8x1xf32>
    %25 = vector.broadcast %24 : vector<8x1xf32> to vector<8x32xf32>
    %26 = arith.mulf %21, %25 : vector<8x32xf32>
    %27 = vector.broadcast %7 : vector<1x32xf32> to vector<8x32xf32>
    %28 = arith.mulf %26, %27 : vector<8x32xf32>
    %29 = vector.broadcast %8 : vector<1x32xf32> to vector<8x32xf32>
    %30 = arith.addf %28, %29 : vector<8x32xf32>
    %c0_14 = arith.constant 0 : index
    %c0_15 = arith.constant 0 : index
    %c0_16 = arith.constant 0 : index
    %31 = vector.load %arg6[%c0_14, %c0_15, %c0_16] : memref<1x8x32xf32, #tpu.memory_space<vmem>>, vector<1x8x32xf32>
    %32 = vector.shape_cast %31 : vector<1x8x32xf32> to vector<8x32xf32>
    %33 = vector.shape_cast %30 : vector<8x32xf32> to vector<1x8x32xf32>
    tpu.vector_store %arg6[%c0_14, %c0_15, %c0_16], %33 {strides = array<i32>} : memref<1x8x32xf32, #tpu.memory_space<vmem>>, vector<1x8x32xf32>,
    return
  }
  func.func @transform_0(%arg0: i32) -> (i32, i32, i32) {
    %c0_i32 = arith.constant 0 : i32
    %c0_i32_0 = arith.constant 0 : i32
    %c0_i32_1 = arith.constant 0 : i32
    return %arg0, %c0_i32, %c0_i32_0 : i32, i32, i32
  }
  func.func @transform_1(%arg0: i32) -> (i32, i32) {
    %c0_i32 = arith.constant 0 : i32
    %c0_i32_0 = arith.constant 0 : i32
    %c0_i32_1 = arith.constant 0 : i32
    return %c0_i32, %c0_i32_0 : i32, i32
  }
  func.func @transform_2(%arg0: i32) -> (i32, i32) {
    %c0_i32 = arith.constant 0 : i32
    %c0_i32_0 = arith.constant 0 : i32
    %c0_i32_1 = arith.constant 0 : i32
    return %c0_i32, %c0_i32_0 : i32, i32
  }
  func.func @transform_3(%arg0: i32) -> (i32, i32) {
    %c0_i32 = arith.constant 0 : i32
    %c0_i32_0 = arith.constant 0 : i32
    %c0_i32_1 = arith.constant 0 : i32
    return %c0_i32, %c0_i32_0 : i32, i32
  }
  func.func @transform_4(%arg0: i32) -> (i32, i32) {
    %c0_i32 = arith.constant 0 : i32
    %c0_i32_0 = arith.constant 0 : i32
    %c0_i32_1 = arith.constant 0 : i32
    return %c0_i32, %c0_i32_0 : i32, i32
  }
  func.func @transform_5(%arg0: i32) -> (i32, i32, i32) {
    %c0_i32 = arith.constant 0 : i32
    %c0_i32_0 = arith.constant 0 : i32
    %c0_i32_1 = arith.constant 0 : i32
    return %arg0, %c0_i32, %c0_i32_0 : i32, i32, i32
  }
}

module attributes {stable_mosaic.version = 11 : i64} {
  func.func @_bert_layer_kernel(%arg0: i32, %arg1: memref<1x8x32xf32, #tpu.memory_space<vmem>>, %arg2: memref<1x1x8xi32, #tpu.memory_space<vmem>>, %arg3: memref<32x96xf32, #tpu.memory_space<vmem>>, %arg4: memref<1x96xf32, #tpu.memory_space<vmem>>, %arg5: memref<32x32xf32, #tpu.memory_space<vmem>>, %arg6: memref<1x32xf32, #tpu.memory_space<vmem>>, %arg7: memref<1x32xf32, #tpu.memory_space<vmem>>, %arg8: memref<1x32xf32, #tpu.memory_space<vmem>>, %arg9: memref<32x64xf32, #tpu.memory_space<vmem>>, %arg10: memref<1x64xf32, #tpu.memory_space<vmem>>, %arg11: memref<64x32xf32, #tpu.memory_space<vmem>>, %arg12: memref<1x32xf32, #tpu.memory_space<vmem>>, %arg13: memref<1x32xf32, #tpu.memory_space<vmem>>, %arg14: memref<1x32xf32, #tpu.memory_space<vmem>>, %arg15: memref<1x8x32xf32, #tpu.memory_space<vmem>>) attributes {dimension_semantics = [#tpu.dimension_semantics<parallel>], iteration_bounds = array<i64: 2>, scalar_prefetch = 0 : i64, scratch_operands = 0 : i64, tpu.core_type = #tpu.core_type<tc>, window_params = [{transform_indices = @transform_0, window_bounds = array<i64: 1, 8, 32>}, {transform_indices = @transform_1, window_bounds = array<i64: 1, 1, 8>}, {pipeline_mode = #tpu.pipeline_mode<synchronous>, transform_indices = @transform_2, window_bounds = array<i64: 32, 96>}, {pipeline_mode = #tpu.pipeline_mode<synchronous>, transform_indices = @transform_3, window_bounds = array<i64: 1, 96>}, {pipeline_mode = #tpu.pipeline_mode<synchronous>, transform_indices = @transform_4, window_bounds = array<i64: 32, 32>}, {pipeline_mode = #tpu.pipeline_mode<synchronous>, transform_indices = @transform_5, window_bounds = array<i64: 1, 32>}, {pipeline_mode = #tpu.pipeline_mode<synchronous>, transform_indices = @transform_6, window_bounds = array<i64: 1, 32>}, {pipeline_mode = #tpu.pipeline_mode<synchronous>, transform_indices = @transform_7, window_bounds = array<i64: 1, 32>}, {pipeline_mode = #tpu.pipeline_mode<synchronous>, transform_indices = @transform_8, window_bounds = array<i64: 32, 64>}, {pipeline_mode = #tpu.pipeline_mode<synchronous>, transform_indices = @transform_9, window_bounds = array<i64: 1, 64>}, {pipeline_mode = #tpu.pipeline_mode<synchronous>, transform_indices = @transform_10, window_bounds = array<i64: 64, 32>}, {pipeline_mode = #tpu.pipeline_mode<synchronous>, transform_indices = @transform_11, window_bounds = array<i64: 1, 32>}, {pipeline_mode = #tpu.pipeline_mode<synchronous>, transform_indices = @transform_12, window_bounds = array<i64: 1, 32>}, {pipeline_mode = #tpu.pipeline_mode<synchronous>, transform_indices = @transform_13, window_bounds = array<i64: 1, 32>}, {transform_indices = @transform_14, window_bounds = array<i64: 1, 8, 32>}]} {
    %c0 = arith.constant 0 : index
    %c0_0 = arith.constant 0 : index
    %c0_1 = arith.constant 0 : index
    %0 = vector.load %arg1[%c0, %c0_0, %c0_1] : memref<1x8x32xf32, #tpu.memory_space<vmem>>, vector<1x8x32xf32>
    %1 = vector.shape_cast %0 : vector<1x8x32xf32> to vector<8x32xf32>
    %c0_2 = arith.constant 0 : index
    %c0_3 = arith.constant 0 : index
    %2 = vector.load %arg3[%c0_2, %c0_3] : memref<32x96xf32, #tpu.memory_space<vmem>>, vector<32x96xf32>
    %cst = arith.constant dense<0.000000e+00> : vector<8x96xf32>
    %3 = tpu.matmul %1, %2, %cst {dimension_numbers = #tpu.dot_dimension_numbers<[1], [0], [0], [1], [0, 0, 1, 1], [], []>} : vector<8x32xf32>, vector<32x96xf32>, vector<8x96xf32> -> vector<8x96xf32>
    %c0_4 = arith.constant 0 : index
    %c0_5 = arith.constant 0 : index
    %4 = vector.load %arg4[%c0_4, %c0_5] : memref<1x96xf32, #tpu.memory_space<vmem>>, vector<1x96xf32>
    %5 = vector.broadcast %4 : vector<1x96xf32> to vector<8x96xf32>
    %6 = arith.addf %3, %5 : vector<8x96xf32>
    %c0_6 = arith.constant 0 : index
    %c0_7 = arith.constant 0 : index
    %c0_8 = arith.constant 0 : index
    %7 = vector.load %arg2[%c0_6, %c0_7, %c0_8] : memref<1x1x8xi32, #tpu.memory_space<vmem>>, vector<1x1x8xi32>
    %8 = vector.shape_cast %7 : vector<1x1x8xi32> to vector<1x8xi32>
    %c0_i32 = arith.constant 0 : i32
    %9 = vector.broadcast %c0_i32 : i32 to vector<1x8xi32>
    %10 = arith.cmpi eq, %8, %9 : vector<1x8xi32>
    %cst_9 = arith.constant -1.000000e+09 : f32
    %cst_10 = arith.constant 0.000000e+00 : f32
    %11 = vector.broadcast %cst_9 : f32 to vector<1x8xf32>
    %12 = vector.broadcast %cst_10 : f32 to vector<1x8xf32>
    %13 = arith.select %10, %11, %12 : vector<1x8xi1>, vector<1x8xf32>
    %cst_11 = arith.constant 0.000000e+00 : f32
    %14 = vector.broadcast %cst_11 : f32 to vector<8x32xf32>
    %c0_12 = arith.constant 0 : index
    %c0_13 = arith.constant 0 : index
    %15 = vector.load %arg6[%c0_12, %c0_13] : memref<1x32xf32, #tpu.memory_space<vmem>>, vector<1x32xf32>
    %16 = vector.broadcast %15 : vector<1x32xf32> to vector<8x32xf32>
    %17 = arith.addf %14, %16 : vector<8x32xf32>
    %18 = vector.extract_strided_slice %6 {offsets = [0, 0], sizes = [8, 8], strides = [1, 1]} : vector<8x96xf32> to vector<8x8xf32>
    %19 = vector.extract_strided_slice %6 {offsets = [0, 32], sizes = [8, 8], strides = [1, 1]} : vector<8x96xf32> to vector<8x8xf32>
    %20 = vector.extract_strided_slice %6 {offsets = [0, 64], sizes = [8, 8], strides = [1, 1]} : vector<8x96xf32> to vector<8x8xf32>
    %21 = tpu.transpose %19, [1, 0] : vector<8x8xf32> -> vector<8x8xf32>
    %cst_14 = arith.constant dense<0.000000e+00> : vector<8x8xf32>
    %22 = tpu.matmul %18, %21, %cst_14 {dimension_numbers = #tpu.dot_dimension_numbers<[1], [0], [0], [1], [0, 0, 1, 1], [], []>} : vector<8x8xf32>, vector<8x8xf32>, vector<8x8xf32> -> vector<8x8xf32>
    %cst_15 = arith.constant 0.353553385 : f32
    %23 = vector.broadcast %cst_15 : f32 to vector<8x8xf32>
    %24 = arith.mulf %22, %23 : vector<8x8xf32>
    %25 = vector.broadcast %13 : vector<1x8xf32> to vector<8x8xf32>
    %26 = arith.addf %24, %25 : vector<8x8xf32>
    %cst_16 = arith.constant dense<0xFF800000> : vector<8xf32>
    %27 = vector.multi_reduction <maximumf>, %26, %cst_16 [1] : vector<8x8xf32> to vector<8xf32>
    %28 = vector.shape_cast %27 : vector<8xf32> to vector<8x1xf32>
    %29 = vector.broadcast %28 : vector<8x1xf32> to vector<8x8xf32>
    %30 = arith.subf %26, %29 : vector<8x8xf32>
    %31 = math.exp %30 : vector<8x8xf32>
    %cst_17 = arith.constant dense<0.000000e+00> : vector<8xf32>
    %32 = vector.multi_reduction <add>, %31, %cst_17 [1] : vector<8x8xf32> to vector<8xf32>
    %33 = vector.shape_cast %32 : vector<8xf32> to vector<8x1xf32>
    %34 = tpu.reciprocal %33 {approx = true} : vector<8x1xf32> -> vector<8x1xf32>
    %35 = vector.broadcast %34 : vector<8x1xf32> to vector<8x8xf32>
    %36 = arith.mulf %31, %35 : vector<8x8xf32>
    %cst_18 = arith.constant dense<0.000000e+00> : vector<8x8xf32>
    %37 = tpu.matmul %36, %20, %cst_18 {dimension_numbers = #tpu.dot_dimension_numbers<[1], [0], [0], [1], [0, 0, 1, 1], [], []>} : vector<8x8xf32>, vector<8x8xf32>, vector<8x8xf32> -> vector<8x8xf32>
    %c0_19 = arith.constant 0 : index
    %c0_20 = arith.constant 0 : index
    %38 = vector.load %arg5[%c0_19, %c0_20] : memref<32x32xf32, #tpu.memory_space<vmem>>, vector<8x32xf32>
    %cst_21 = arith.constant dense<0.000000e+00> : vector<8x32xf32>
    %39 = tpu.matmul %37, %38, %cst_21 {dimension_numbers = #tpu.dot_dimension_numbers<[1], [0], [0], [1], [0, 0, 1, 1], [], []>} : vector<8x8xf32>, vector<8x32xf32>, vector<8x32xf32> -> vector<8x32xf32>
    %40 = arith.addf %17, %39 : vector<8x32xf32>
    %41 = vector.extract_strided_slice %6 {offsets = [0, 8], sizes = [8, 8], strides = [1, 1]} : vector<8x96xf32> to vector<8x8xf32>
    %42 = vector.extract_strided_slice %6 {offsets = [0, 40], sizes = [8, 8], strides = [1, 1]} : vector<8x96xf32> to vector<8x8xf32>
    %43 = vector.extract_strided_slice %6 {offsets = [0, 72], sizes = [8, 8], strides = [1, 1]} : vector<8x96xf32> to vector<8x8xf32>
    %44 = tpu.transpose %42, [1, 0] : vector<8x8xf32> -> vector<8x8xf32>
    %cst_22 = arith.constant dense<0.000000e+00> : vector<8x8xf32>
    %45 = tpu.matmul %41, %44, %cst_22 {dimension_numbers = #tpu.dot_dimension_numbers<[1], [0], [0], [1], [0, 0, 1, 1], [], []>} : vector<8x8xf32>, vector<8x8xf32>, vector<8x8xf32> -> vector<8x8xf32>
    %cst_23 = arith.constant 0.353553385 : f32
    %46 = vector.broadcast %cst_23 : f32 to vector<8x8xf32>
    %47 = arith.mulf %45, %46 : vector<8x8xf32>
    %48 = vector.broadcast %13 : vector<1x8xf32> to vector<8x8xf32>
    %49 = arith.addf %47, %48 : vector<8x8xf32>
    %cst_24 = arith.constant dense<0xFF800000> : vector<8xf32>
    %50 = vector.multi_reduction <maximumf>, %49, %cst_24 [1] : vector<8x8xf32> to vector<8xf32>
    %51 = vector.shape_cast %50 : vector<8xf32> to vector<8x1xf32>
    %52 = vector.broadcast %51 : vector<8x1xf32> to vector<8x8xf32>
    %53 = arith.subf %49, %52 : vector<8x8xf32>
    %54 = math.exp %53 : vector<8x8xf32>
    %cst_25 = arith.constant dense<0.000000e+00> : vector<8xf32>
    %55 = vector.multi_reduction <add>, %54, %cst_25 [1] : vector<8x8xf32> to vector<8xf32>
    %56 = vector.shape_cast %55 : vector<8xf32> to vector<8x1xf32>
    %57 = tpu.reciprocal %56 {approx = true} : vector<8x1xf32> -> vector<8x1xf32>
    %58 = vector.broadcast %57 : vector<8x1xf32> to vector<8x8xf32>
    %59 = arith.mulf %54, %58 : vector<8x8xf32>
    %cst_26 = arith.constant dense<0.000000e+00> : vector<8x8xf32>
    %60 = tpu.matmul %59, %43, %cst_26 {dimension_numbers = #tpu.dot_dimension_numbers<[1], [0], [0], [1], [0, 0, 1, 1], [], []>} : vector<8x8xf32>, vector<8x8xf32>, vector<8x8xf32> -> vector<8x8xf32>
    %c8 = arith.constant 8 : index
    %c0_27 = arith.constant 0 : index
    %61 = vector.load %arg5[%c8, %c0_27] : memref<32x32xf32, #tpu.memory_space<vmem>>, vector<8x32xf32>
    %cst_28 = arith.constant dense<0.000000e+00> : vector<8x32xf32>
    %62 = tpu.matmul %60, %61, %cst_28 {dimension_numbers = #tpu.dot_dimension_numbers<[1], [0], [0], [1], [0, 0, 1, 1], [], []>} : vector<8x8xf32>, vector<8x32xf32>, vector<8x32xf32> -> vector<8x32xf32>
    %63 = arith.addf %40, %62 : vector<8x32xf32>
    %64 = vector.extract_strided_slice %6 {offsets = [0, 16], sizes = [8, 8], strides = [1, 1]} : vector<8x96xf32> to vector<8x8xf32>
    %65 = vector.extract_strided_slice %6 {offsets = [0, 48], sizes = [8, 8], strides = [1, 1]} : vector<8x96xf32> to vector<8x8xf32>
    %66 = vector.extract_strided_slice %6 {offsets = [0, 80], sizes = [8, 8], strides = [1, 1]} : vector<8x96xf32> to vector<8x8xf32>
    %67 = tpu.transpose %65, [1, 0] : vector<8x8xf32> -> vector<8x8xf32>
    %cst_29 = arith.constant dense<0.000000e+00> : vector<8x8xf32>
    %68 = tpu.matmul %64, %67, %cst_29 {dimension_numbers = #tpu.dot_dimension_numbers<[1], [0], [0], [1], [0, 0, 1, 1], [], []>} : vector<8x8xf32>, vector<8x8xf32>, vector<8x8xf32> -> vector<8x8xf32>
    %cst_30 = arith.constant 0.353553385 : f32
    %69 = vector.broadcast %cst_30 : f32 to vector<8x8xf32>
    %70 = arith.mulf %68, %69 : vector<8x8xf32>
    %71 = vector.broadcast %13 : vector<1x8xf32> to vector<8x8xf32>
    %72 = arith.addf %70, %71 : vector<8x8xf32>
    %cst_31 = arith.constant dense<0xFF800000> : vector<8xf32>
    %73 = vector.multi_reduction <maximumf>, %72, %cst_31 [1] : vector<8x8xf32> to vector<8xf32>
    %74 = vector.shape_cast %73 : vector<8xf32> to vector<8x1xf32>
    %75 = vector.broadcast %74 : vector<8x1xf32> to vector<8x8xf32>
    %76 = arith.subf %72, %75 : vector<8x8xf32>
    %77 = math.exp %76 : vector<8x8xf32>
    %cst_32 = arith.constant dense<0.000000e+00> : vector<8xf32>
    %78 = vector.multi_reduction <add>, %77, %cst_32 [1] : vector<8x8xf32> to vector<8xf32>
    %79 = vector.shape_cast %78 : vector<8xf32> to vector<8x1xf32>
    %80 = tpu.reciprocal %79 {approx = true} : vector<8x1xf32> -> vector<8x1xf32>
    %81 = vector.broadcast %80 : vector<8x1xf32> to vector<8x8xf32>
    %82 = arith.mulf %77, %81 : vector<8x8xf32>
    %cst_33 = arith.constant dense<0.000000e+00> : vector<8x8xf32>
    %83 = tpu.matmul %82, %66, %cst_33 {dimension_numbers = #tpu.dot_dimension_numbers<[1], [0], [0], [1], [0, 0, 1, 1], [], []>} : vector<8x8xf32>, vector<8x8xf32>, vector<8x8xf32> -> vector<8x8xf32>
    %c16 = arith.constant 16 : index
    %c0_34 = arith.constant 0 : index
    %84 = vector.load %arg5[%c16, %c0_34] : memref<32x32xf32, #tpu.memory_space<vmem>>, vector<8x32xf32>
    %cst_35 = arith.constant dense<0.000000e+00> : vector<8x32xf32>
    %85 = tpu.matmul %83, %84, %cst_35 {dimension_numbers = #tpu.dot_dimension_numbers<[1], [0], [0], [1], [0, 0, 1, 1], [], []>} : vector<8x8xf32>, vector<8x32xf32>, vector<8x32xf32> -> vector<8x32xf32>
    %86 = arith.addf %63, %85 : vector<8x32xf32>
    %87 = vector.extract_strided_slice %6 {offsets = [0, 24], sizes = [8, 8], strides = [1, 1]} : vector<8x96xf32> to vector<8x8xf32>
    %88 = vector.extract_strided_slice %6 {offsets = [0, 56], sizes = [8, 8], strides = [1, 1]} : vector<8x96xf32> to vector<8x8xf32>
    %89 = vector.extract_strided_slice %6 {offsets = [0, 88], sizes = [8, 8], strides = [1, 1]} : vector<8x96xf32> to vector<8x8xf32>
    %90 = tpu.transpose %88, [1, 0] : vector<8x8xf32> -> vector<8x8xf32>
    %cst_36 = arith.constant dense<0.000000e+00> : vector<8x8xf32>
    %91 = tpu.matmul %87, %90, %cst_36 {dimension_numbers = #tpu.dot_dimension_numbers<[1], [0], [0], [1], [0, 0, 1, 1], [], []>} : vector<8x8xf32>, vector<8x8xf32>, vector<8x8xf32> -> vector<8x8xf32>
    %cst_37 = arith.constant 0.353553385 : f32
    %92 = vector.broadcast %cst_37 : f32 to vector<8x8xf32>
    %93 = arith.mulf %91, %92 : vector<8x8xf32>
    %94 = vector.broadcast %13 : vector<1x8xf32> to vector<8x8xf32>
    %95 = arith.addf %93, %94 : vector<8x8xf32>
    %cst_38 = arith.constant dense<0xFF800000> : vector<8xf32>
    %96 = vector.multi_reduction <maximumf>, %95, %cst_38 [1] : vector<8x8xf32> to vector<8xf32>
    %97 = vector.shape_cast %96 : vector<8xf32> to vector<8x1xf32>
    %98 = vector.broadcast %97 : vector<8x1xf32> to vector<8x8xf32>
    %99 = arith.subf %95, %98 : vector<8x8xf32>
    %100 = math.exp %99 : vector<8x8xf32>
    %cst_39 = arith.constant dense<0.000000e+00> : vector<8xf32>
    %101 = vector.multi_reduction <add>, %100, %cst_39 [1] : vector<8x8xf32> to vector<8xf32>
    %102 = vector.shape_cast %101 : vector<8xf32> to vector<8x1xf32>
    %103 = tpu.reciprocal %102 {approx = true} : vector<8x1xf32> -> vector<8x1xf32>
    %104 = vector.broadcast %103 : vector<8x1xf32> to vector<8x8xf32>
    %105 = arith.mulf %100, %104 : vector<8x8xf32>
    %cst_40 = arith.constant dense<0.000000e+00> : vector<8x8xf32>
    %106 = tpu.matmul %105, %89, %cst_40 {dimension_numbers = #tpu.dot_dimension_numbers<[1], [0], [0], [1], [0, 0, 1, 1], [], []>} : vector<8x8xf32>, vector<8x8xf32>, vector<8x8xf32> -> vector<8x8xf32>
    %c24 = arith.constant 24 : index
    %c0_41 = arith.constant 0 : index
    %107 = vector.load %arg5[%c24, %c0_41] : memref<32x32xf32, #tpu.memory_space<vmem>>, vector<8x32xf32>
    %cst_42 = arith.constant dense<0.000000e+00> : vector<8x32xf32>
    %108 = tpu.matmul %106, %107, %cst_42 {dimension_numbers = #tpu.dot_dimension_numbers<[1], [0], [0], [1], [0, 0, 1, 1], [], []>} : vector<8x8xf32>, vector<8x32xf32>, vector<8x32xf32> -> vector<8x32xf32>
    %109 = arith.addf %86, %108 : vector<8x32xf32>
    %110 = arith.addf %1, %109 : vector<8x32xf32>
    %c0_43 = arith.constant 0 : index
    %c0_44 = arith.constant 0 : index
    %111 = vector.load %arg7[%c0_43, %c0_44] : memref<1x32xf32, #tpu.memory_space<vmem>>, vector<1x32xf32>
    %c0_45 = arith.constant 0 : index
    %c0_46 = arith.constant 0 : index
    %112 = vector.load %arg8[%c0_45, %c0_46] : memref<1x32xf32, #tpu.memory_space<vmem>>, vector<1x32xf32>
    %cst_47 = arith.constant dense<0.000000e+00> : vector<8xf32>
    %113 = vector.multi_reduction <add>, %110, %cst_47 [1] : vector<8x32xf32> to vector<8xf32>
    %114 = vector.shape_cast %113 : vector<8xf32> to vector<8x1xf32>
    %cst_48 = arith.constant 3.200000e+01 : f32
    %115 = vector.broadcast %cst_48 : f32 to vector<8x1xf32>
    %116 = arith.divf %114, %115 : vector<8x1xf32>
    %117 = vector.broadcast %116 : vector<8x1xf32> to vector<8x32xf32>
    %118 = arith.subf %110, %117 : vector<8x32xf32>
    %119 = arith.mulf %118, %118 : vector<8x32xf32>
    %cst_49 = arith.constant dense<0.000000e+00> : vector<8xf32>
    %120 = vector.multi_reduction <add>, %119, %cst_49 [1] : vector<8x32xf32> to vector<8xf32>
    %121 = vector.shape_cast %120 : vector<8xf32> to vector<8x1xf32>
    %cst_50 = arith.constant 3.200000e+01 : f32
    %122 = vector.broadcast %cst_50 : f32 to vector<8x1xf32>
    %123 = arith.divf %121, %122 : vector<8x1xf32>
    %124 = vector.broadcast %116 : vector<8x1xf32> to vector<8x32xf32>
    %125 = arith.subf %110, %124 : vector<8x32xf32>
    %cst_51 = arith.constant 9.99999996E-13 : f32
    %126 = vector.broadcast %cst_51 : f32 to vector<8x1xf32>
    %127 = arith.addf %123, %126 : vector<8x1xf32>
    %128 = math.rsqrt %127 : vector<8x1xf32>
    %129 = vector.broadcast %128 : vector<8x1xf32> to vector<8x32xf32>
    %130 = arith.mulf %125, %129 : vector<8x32xf32>
    %131 = vector.broadcast %111 : vector<1x32xf32> to vector<8x32xf32>
    %132 = arith.mulf %130, %131 : vector<8x32xf32>
    %133 = vector.broadcast %112 : vector<1x32xf32> to vector<8x32xf32>
    %134 = arith.addf %132, %133 : vector<8x32xf32>
    %c0_52 = arith.constant 0 : index
    %c0_53 = arith.constant 0 : index
    %135 = vector.load %arg9[%c0_52, %c0_53] : memref<32x64xf32, #tpu.memory_space<vmem>>, vector<32x64xf32>
    %cst_54 = arith.constant dense<0.000000e+00> : vector<8x64xf32>
    %136 = tpu.matmul %134, %135, %cst_54 {dimension_numbers = #tpu.dot_dimension_numbers<[1], [0], [0], [1], [0, 0, 1, 1], [], []>} : vector<8x32xf32>, vector<32x64xf32>, vector<8x64xf32> -> vector<8x64xf32>
    %c0_55 = arith.constant 0 : index
    %c0_56 = arith.constant 0 : index
    %137 = vector.load %arg10[%c0_55, %c0_56] : memref<1x64xf32, #tpu.memory_space<vmem>>, vector<1x64xf32>
    %138 = vector.broadcast %137 : vector<1x64xf32> to vector<8x64xf32>
    %139 = arith.addf %136, %138 : vector<8x64xf32>
    %cst_57 = arith.constant 5.000000e-01 : f32
    %140 = vector.broadcast %cst_57 : f32 to vector<8x64xf32>
    %141 = arith.mulf %140, %139 : vector<8x64xf32>
    %cst_58 = arith.constant 4.471500e-02 : f32
    %142 = vector.broadcast %cst_58 : f32 to vector<8x64xf32>
    %143 = arith.mulf %142, %139 : vector<8x64xf32>
    %144 = arith.mulf %143, %139 : vector<8x64xf32>
    %145 = arith.mulf %144, %139 : vector<8x64xf32>
    %146 = arith.addf %139, %145 : vector<8x64xf32>
    %cst_59 = arith.constant 0.797884583 : f32
    %147 = vector.broadcast %cst_59 : f32 to vector<8x64xf32>
    %148 = arith.mulf %147, %146 : vector<8x64xf32>
    %149 = math.tanh %148 : vector<8x64xf32>
    %cst_60 = arith.constant 1.000000e+00 : f32
    %150 = vector.broadcast %cst_60 : f32 to vector<8x64xf32>
    %151 = arith.addf %150, %149 : vector<8x64xf32>
    %152 = arith.mulf %141, %151 : vector<8x64xf32>
    %c0_61 = arith.constant 0 : index
    %c0_62 = arith.constant 0 : index
    %153 = vector.load %arg11[%c0_61, %c0_62] : memref<64x32xf32, #tpu.memory_space<vmem>>, vector<64x32xf32>
    %cst_63 = arith.constant dense<0.000000e+00> : vector<8x32xf32>
    %154 = tpu.matmul %152, %153, %cst_63 {dimension_numbers = #tpu.dot_dimension_numbers<[1], [0], [0], [1], [0, 0, 1, 1], [], []>} : vector<8x64xf32>, vector<64x32xf32>, vector<8x32xf32> -> vector<8x32xf32>
    %c0_64 = arith.constant 0 : index
    %c0_65 = arith.constant 0 : index
    %155 = vector.load %arg12[%c0_64, %c0_65] : memref<1x32xf32, #tpu.memory_space<vmem>>, vector<1x32xf32>
    %156 = vector.broadcast %155 : vector<1x32xf32> to vector<8x32xf32>
    %157 = arith.addf %154, %156 : vector<8x32xf32>
    %158 = arith.addf %134, %157 : vector<8x32xf32>
    %c0_66 = arith.constant 0 : index
    %c0_67 = arith.constant 0 : index
    %159 = vector.load %arg13[%c0_66, %c0_67] : memref<1x32xf32, #tpu.memory_space<vmem>>, vector<1x32xf32>
    %c0_68 = arith.constant 0 : index
    %c0_69 = arith.constant 0 : index
    %160 = vector.load %arg14[%c0_68, %c0_69] : memref<1x32xf32, #tpu.memory_space<vmem>>, vector<1x32xf32>
    %cst_70 = arith.constant dense<0.000000e+00> : vector<8xf32>
    %161 = vector.multi_reduction <add>, %158, %cst_70 [1] : vector<8x32xf32> to vector<8xf32>
    %162 = vector.shape_cast %161 : vector<8xf32> to vector<8x1xf32>
    %cst_71 = arith.constant 3.200000e+01 : f32
    %163 = vector.broadcast %cst_71 : f32 to vector<8x1xf32>
    %164 = arith.divf %162, %163 : vector<8x1xf32>
    %165 = vector.broadcast %164 : vector<8x1xf32> to vector<8x32xf32>
    %166 = arith.subf %158, %165 : vector<8x32xf32>
    %167 = arith.mulf %166, %166 : vector<8x32xf32>
    %cst_72 = arith.constant dense<0.000000e+00> : vector<8xf32>
    %168 = vector.multi_reduction <add>, %167, %cst_72 [1] : vector<8x32xf32> to vector<8xf32>
    %169 = vector.shape_cast %168 : vector<8xf32> to vector<8x1xf32>
    %cst_73 = arith.constant 3.200000e+01 : f32
    %170 = vector.broadcast %cst_73 : f32 to vector<8x1xf32>
    %171 = arith.divf %169, %170 : vector<8x1xf32>
    %172 = vector.broadcast %164 : vector<8x1xf32> to vector<8x32xf32>
    %173 = arith.subf %158, %172 : vector<8x32xf32>
    %cst_74 = arith.constant 9.99999996E-13 : f32
    %174 = vector.broadcast %cst_74 : f32 to vector<8x1xf32>
    %175 = arith.addf %171, %174 : vector<8x1xf32>
    %176 = math.rsqrt %175 : vector<8x1xf32>
    %177 = vector.broadcast %176 : vector<8x1xf32> to vector<8x32xf32>
    %178 = arith.mulf %173, %177 : vector<8x32xf32>
    %179 = vector.broadcast %159 : vector<1x32xf32> to vector<8x32xf32>
    %180 = arith.mulf %178, %179 : vector<8x32xf32>
    %181 = vector.broadcast %160 : vector<1x32xf32> to vector<8x32xf32>
    %182 = arith.addf %180, %181 : vector<8x32xf32>
    %c0_75 = arith.constant 0 : index
    %c0_76 = arith.constant 0 : index
    %c0_77 = arith.constant 0 : index
    %183 = vector.load %arg15[%c0_75, %c0_76, %c0_77] : memref<1x8x32xf32, #tpu.memory_space<vmem>>, vector<1x8x32xf32>
    %184 = vector.shape_cast %183 : vector<1x8x32xf32> to vector<8x32xf32>
    %185 = vector.shape_cast %182 : vector<8x32xf32> to vector<1x8x32xf32>
    tpu.vector_store %arg15[%c0_75, %c0_76, %c0_77], %185 {strides = array<i32>} : memref<1x8x32xf32, #tpu.memory_space<vmem>>, vector<1x8x32xf32>,
    return
  }
  func.func @transform_0(%arg0: i32) -> (i32, i32, i32) {
    %c0_i32 = arith.constant 0 : i32
    %c0_i32_0 = arith.constant 0 : i32
    %c0_i32_1 = arith.constant 0 : i32
    return %arg0, %c0_i32, %c0_i32_0 : i32, i32, i32
  }
  func.func @transform_1(%arg0: i32) -> (i32, i32, i32) {
    %c0_i32 = arith.constant 0 : i32
    %c0_i32_0 = arith.constant 0 : i32
    %c0_i32_1 = arith.constant 0 : i32
    return %arg0, %c0_i32, %c0_i32_0 : i32, i32, i32
  }
  func.func @transform_2(%arg0: i32) -> (i32, i32) {
    %c0_i32 = arith.constant 0 : i32
    %c0_i32_0 = arith.constant 0 : i32
    %c0_i32_1 = arith.constant 0 : i32
    return %c0_i32, %c0_i32_0 : i32, i32
  }
  func.func @transform_3(%arg0: i32) -> (i32, i32) {
    %c0_i32 = arith.constant 0 : i32
    %c0_i32_0 = arith.constant 0 : i32
    %c0_i32_1 = arith.constant 0 : i32
    return %c0_i32, %c0_i32_0 : i32, i32
  }
  func.func @transform_4(%arg0: i32) -> (i32, i32) {
    %c0_i32 = arith.constant 0 : i32
    %c0_i32_0 = arith.constant 0 : i32
    %c0_i32_1 = arith.constant 0 : i32
    return %c0_i32, %c0_i32_0 : i32, i32
  }
  func.func @transform_5(%arg0: i32) -> (i32, i32) {
    %c0_i32 = arith.constant 0 : i32
    %c0_i32_0 = arith.constant 0 : i32
    %c0_i32_1 = arith.constant 0 : i32
    return %c0_i32, %c0_i32_0 : i32, i32
  }
  func.func @transform_6(%arg0: i32) -> (i32, i32) {
    %c0_i32 = arith.constant 0 : i32
    %c0_i32_0 = arith.constant 0 : i32
    %c0_i32_1 = arith.constant 0 : i32
    return %c0_i32, %c0_i32_0 : i32, i32
  }
  func.func @transform_7(%arg0: i32) -> (i32, i32) {
    %c0_i32 = arith.constant 0 : i32
    %c0_i32_0 = arith.constant 0 : i32
    %c0_i32_1 = arith.constant 0 : i32
    return %c0_i32, %c0_i32_0 : i32, i32
  }
  func.func @transform_8(%arg0: i32) -> (i32, i32) {
    %c0_i32 = arith.constant 0 : i32
    %c0_i32_0 = arith.constant 0 : i32
    %c0_i32_1 = arith.constant 0 : i32
    return %c0_i32, %c0_i32_0 : i32, i32
  }
  func.func @transform_9(%arg0: i32) -> (i32, i32) {
    %c0_i32 = arith.constant 0 : i32
    %c0_i32_0 = arith.constant 0 : i32
    %c0_i32_1 = arith.constant 0 : i32
    return %c0_i32, %c0_i32_0 : i32, i32
  }
  func.func @transform_10(%arg0: i32) -> (i32, i32) {
    %c0_i32 = arith.constant 0 : i32
    %c0_i32_0 = arith.constant 0 : i32
    %c0_i32_1 = arith.constant 0 : i32
    return %c0_i32, %c0_i32_0 : i32, i32
  }
  func.func @transform_11(%arg0: i32) -> (i32, i32) {
    %c0_i32 = arith.constant 0 : i32
    %c0_i32_0 = arith.constant 0 : i32
    %c0_i32_1 = arith.constant 0 : i32
    return %c0_i32, %c0_i32_0 : i32, i32
  }
  func.func @transform_12(%arg0: i32) -> (i32, i32) {
    %c0_i32 = arith.constant 0 : i32
    %c0_i32_0 = arith.constant 0 : i32
    %c0_i32_1 = arith.constant 0 : i32
    return %c0_i32, %c0_i32_0 : i32, i32
  }
  func.func @transform_13(%arg0: i32) -> (i32, i32) {
    %c0_i32 = arith.constant 0 : i32
    %c0_i32_0 = arith.constant 0 : i32
    %c0_i32_1 = arith.constant 0 : i32
    return %c0_i32, %c0_i32_0 : i32, i32
  }
  func.func @transform_14(%arg0: i32) -> (i32, i32, i32) {
    %c0_i32 = arith.constant 0 : i32
    %c0_i32_0 = arith.constant 0 : i32
    %c0_i32_1 = arith.constant 0 : i32
    return %arg0, %c0_i32, %c0_i32_0 : i32, i32, i32
  }
}

module attributes {stable_mosaic.version = 11 : i64} {
  func.func @_bert_layer_kernel(%arg0: i32, %arg1: memref<1x8x32xf32, #tpu.memory_space<vmem>>, %arg2: memref<1x1x8xi32, #tpu.memory_space<vmem>>, %arg3: memref<32x96xf32, #tpu.memory_space<vmem>>, %arg4: memref<1x96xf32, #tpu.memory_space<vmem>>, %arg5: memref<32x32xf32, #tpu.memory_space<vmem>>, %arg6: memref<1x32xf32, #tpu.memory_space<vmem>>, %arg7: memref<1x32xf32, #tpu.memory_space<vmem>>, %arg8: memref<1x32xf32, #tpu.memory_space<vmem>>, %arg9: memref<32x64xf32, #tpu.memory_space<vmem>>, %arg10: memref<1x64xf32, #tpu.memory_space<vmem>>, %arg11: memref<64x32xf32, #tpu.memory_space<vmem>>, %arg12: memref<1x32xf32, #tpu.memory_space<vmem>>, %arg13: memref<1x32xf32, #tpu.memory_space<vmem>>, %arg14: memref<1x32xf32, #tpu.memory_space<vmem>>, %arg15: memref<1x8x32xf32, #tpu.memory_space<vmem>>) attributes {dimension_semantics = [#tpu.dimension_semantics<parallel>], iteration_bounds = array<i64: 2>, scalar_prefetch = 0 : i64, scratch_operands = 0 : i64, tpu.core_type = #tpu.core_type<tc>, window_params = [{transform_indices = @transform_0, window_bounds = array<i64: 1, 8, 32>}, {transform_indices = @transform_1, window_bounds = array<i64: 1, 1, 8>}, {pipeline_mode = #tpu.pipeline_mode<synchronous>, transform_indices = @transform_2, window_bounds = array<i64: 32, 96>}, {pipeline_mode = #tpu.pipeline_mode<synchronous>, transform_indices = @transform_3, window_bounds = array<i64: 1, 96>}, {pipeline_mode = #tpu.pipeline_mode<synchronous>, transform_indices = @transform_4, window_bounds = array<i64: 32, 32>}, {pipeline_mode = #tpu.pipeline_mode<synchronous>, transform_indices = @transform_5, window_bounds = array<i64: 1, 32>}, {pipeline_mode = #tpu.pipeline_mode<synchronous>, transform_indices = @transform_6, window_bounds = array<i64: 1, 32>}, {pipeline_mode = #tpu.pipeline_mode<synchronous>, transform_indices = @transform_7, window_bounds = array<i64: 1, 32>}, {pipeline_mode = #tpu.pipeline_mode<synchronous>, transform_indices = @transform_8, window_bounds = array<i64: 32, 64>}, {pipeline_mode = #tpu.pipeline_mode<synchronous>, transform_indices = @transform_9, window_bounds = array<i64: 1, 64>}, {pipeline_mode = #tpu.pipeline_mode<synchronous>, transform_indices = @transform_10, window_bounds = array<i64: 64, 32>}, {pipeline_mode = #tpu.pipeline_mode<synchronous>, transform_indices = @transform_11, window_bounds = array<i64: 1, 32>}, {pipeline_mode = #tpu.pipeline_mode<synchronous>, transform_indices = @transform_12, window_bounds = array<i64: 1, 32>}, {pipeline_mode = #tpu.pipeline_mode<synchronous>, transform_indices = @transform_13, window_bounds = array<i64: 1, 32>}, {transform_indices = @transform_14, window_bounds = array<i64: 1, 8, 32>}]} {
    %c0 = arith.constant 0 : index
    %c0_0 = arith.constant 0 : index
    %c0_1 = arith.constant 0 : index
    %0 = vector.load %arg1[%c0, %c0_0, %c0_1] : memref<1x8x32xf32, #tpu.memory_space<vmem>>, vector<1x8x32xf32>
    %1 = vector.shape_cast %0 : vector<1x8x32xf32> to vector<8x32xf32>
    %c0_2 = arith.constant 0 : index
    %c0_3 = arith.constant 0 : index
    %2 = vector.load %arg3[%c0_2, %c0_3] : memref<32x96xf32, #tpu.memory_space<vmem>>, vector<32x96xf32>
    %cst = arith.constant dense<0.000000e+00> : vector<8x96xf32>
    %3 = tpu.matmul %1, %2, %cst {dimension_numbers = #tpu.dot_dimension_numbers<[1], [0], [0], [1], [0, 0, 1, 1], [], []>} : vector<8x32xf32>, vector<32x96xf32>, vector<8x96xf32> -> vector<8x96xf32>
    %c0_4 = arith.constant 0 : index
    %c0_5 = arith.constant 0 : index
    %4 = vector.load %arg4[%c0_4, %c0_5] : memref<1x96xf32, #tpu.memory_space<vmem>>, vector<1x96xf32>
    %5 = vector.broadcast %4 : vector<1x96xf32> to vector<8x96xf32>
    %6 = arith.addf %3, %5 : vector<8x96xf32>
    %c0_6 = arith.constant 0 : index
    %c0_7 = arith.constant 0 : index
    %c0_8 = arith.constant 0 : index
    %7 = vector.load %arg2[%c0_6, %c0_7, %c0_8] : memref<1x1x8xi32, #tpu.memory_space<vmem>>, vector<1x1x8xi32>
    %8 = vector.shape_cast %7 : vector<1x1x8xi32> to vector<1x8xi32>
    %c0_i32 = arith.constant 0 : i32
    %9 = vector.broadcast %c0_i32 : i32 to vector<1x8xi32>
    %10 = arith.cmpi eq, %8, %9 : vector<1x8xi32>
    %cst_9 = arith.constant -1.000000e+09 : f32
    %cst_10 = arith.constant 0.000000e+00 : f32
    %11 = vector.broadcast %cst_9 : f32 to vector<1x8xf32>
    %12 = vector.broadcast %cst_10 : f32 to vector<1x8xf32>
    %13 = arith.select %10, %11, %12 : vector<1x8xi1>, vector<1x8xf32>
    %cst_11 = arith.constant 0.000000e+00 : f32
    %14 = vector.broadcast %cst_11 : f32 to vector<8x32xf32>
    %c0_12 = arith.constant 0 : index
    %c0_13 = arith.constant 0 : index
    %15 = vector.load %arg6[%c0_12, %c0_13] : memref<1x32xf32, #tpu.memory_space<vmem>>, vector<1x32xf32>
    %16 = vector.broadcast %15 : vector<1x32xf32> to vector<8x32xf32>
    %17 = arith.addf %14, %16 : vector<8x32xf32>
    %18 = vector.extract_strided_slice %6 {offsets = [0, 0], sizes = [8, 8], strides = [1, 1]} : vector<8x96xf32> to vector<8x8xf32>
    %19 = vector.extract_strided_slice %6 {offsets = [0, 32], sizes = [8, 8], strides = [1, 1]} : vector<8x96xf32> to vector<8x8xf32>
    %20 = vector.extract_strided_slice %6 {offsets = [0, 64], sizes = [8, 8], strides = [1, 1]} : vector<8x96xf32> to vector<8x8xf32>
    %21 = tpu.transpose %19, [1, 0] : vector<8x8xf32> -> vector<8x8xf32>
    %cst_14 = arith.constant dense<0.000000e+00> : vector<8x8xf32>
    %22 = tpu.matmul %18, %21, %cst_14 {dimension_numbers = #tpu.dot_dimension_numbers<[1], [0], [0], [1], [0, 0, 1, 1], [], []>} : vector<8x8xf32>, vector<8x8xf32>, vector<8x8xf32> -> vector<8x8xf32>
    %cst_15 = arith.constant 0.353553385 : f32
    %23 = vector.broadcast %cst_15 : f32 to vector<8x8xf32>
    %24 = arith.mulf %22, %23 : vector<8x8xf32>
    %25 = vector.broadcast %13 : vector<1x8xf32> to vector<8x8xf32>
    %26 = arith.addf %24, %25 : vector<8x8xf32>
    %cst_16 = arith.constant dense<0xFF800000> : vector<8xf32>
    %27 = vector.multi_reduction <maximumf>, %26, %cst_16 [1] : vector<8x8xf32> to vector<8xf32>
    %28 = vector.shape_cast %27 : vector<8xf32> to vector<8x1xf32>
    %29 = vector.broadcast %28 : vector<8x1xf32> to vector<8x8xf32>
    %30 = arith.subf %26, %29 : vector<8x8xf32>
    %31 = math.exp %30 : vector<8x8xf32>
    %cst_17 = arith.constant dense<0.000000e+00> : vector<8xf32>
    %32 = vector.multi_reduction <add>, %31, %cst_17 [1] : vector<8x8xf32> to vector<8xf32>
    %33 = vector.shape_cast %32 : vector<8xf32> to vector<8x1xf32>
    %34 = tpu.reciprocal %33 {approx = true} : vector<8x1xf32> -> vector<8x1xf32>
    %35 = vector.broadcast %34 : vector<8x1xf32> to vector<8x8xf32>
    %36 = arith.mulf %31, %35 : vector<8x8xf32>
    %cst_18 = arith.constant dense<0.000000e+00> : vector<8x8xf32>
    %37 = tpu.matmul %36, %20, %cst_18 {dimension_numbers = #tpu.dot_dimension_numbers<[1], [0], [0], [1], [0, 0, 1, 1], [], []>} : vector<8x8xf32>, vector<8x8xf32>, vector<8x8xf32> -> vector<8x8xf32>
    %c0_19 = arith.constant 0 : index
    %c0_20 = arith.constant 0 : index
    %38 = vector.load %arg5[%c0_19, %c0_20] : memref<32x32xf32, #tpu.memory_space<vmem>>, vector<8x32xf32>
    %cst_21 = arith.constant dense<0.000000e+00> : vector<8x32xf32>
    %39 = tpu.matmul %37, %38, %cst_21 {dimension_numbers = #tpu.dot_dimension_numbers<[1], [0], [0], [1], [0, 0, 1, 1], [], []>} : vector<8x8xf32>, vector<8x32xf32>, vector<8x32xf32> -> vector<8x32xf32>
    %40 = arith.addf %17, %39 : vector<8x32xf32>
    %41 = vector.extract_strided_slice %6 {offsets = [0, 8], sizes = [8, 8], strides = [1, 1]} : vector<8x96xf32> to vector<8x8xf32>
    %42 = vector.extract_strided_slice %6 {offsets = [0, 40], sizes = [8, 8], strides = [1, 1]} : vector<8x96xf32> to vector<8x8xf32>
    %43 = vector.extract_strided_slice %6 {offsets = [0, 72], sizes = [8, 8], strides = [1, 1]} : vector<8x96xf32> to vector<8x8xf32>
    %44 = tpu.transpose %42, [1, 0] : vector<8x8xf32> -> vector<8x8xf32>
    %cst_22 = arith.constant dense<0.000000e+00> : vector<8x8xf32>
    %45 = tpu.matmul %41, %44, %cst_22 {dimension_numbers = #tpu.dot_dimension_numbers<[1], [0], [0], [1], [0, 0, 1, 1], [], []>} : vector<8x8xf32>, vector<8x8xf32>, vector<8x8xf32> -> vector<8x8xf32>
    %cst_23 = arith.constant 0.353553385 : f32
    %46 = vector.broadcast %cst_23 : f32 to vector<8x8xf32>
    %47 = arith.mulf %45, %46 : vector<8x8xf32>
    %48 = vector.broadcast %13 : vector<1x8xf32> to vector<8x8xf32>
    %49 = arith.addf %47, %48 : vector<8x8xf32>
    %cst_24 = arith.constant dense<0xFF800000> : vector<8xf32>
    %50 = vector.multi_reduction <maximumf>, %49, %cst_24 [1] : vector<8x8xf32> to vector<8xf32>
    %51 = vector.shape_cast %50 : vector<8xf32> to vector<8x1xf32>
    %52 = vector.broadcast %51 : vector<8x1xf32> to vector<8x8xf32>
    %53 = arith.subf %49, %52 : vector<8x8xf32>
    %54 = math.exp %53 : vector<8x8xf32>
    %cst_25 = arith.constant dense<0.000000e+00> : vector<8xf32>
    %55 = vector.multi_reduction <add>, %54, %cst_25 [1] : vector<8x8xf32> to vector<8xf32>
    %56 = vector.shape_cast %55 : vector<8xf32> to vector<8x1xf32>
    %57 = tpu.reciprocal %56 {approx = true} : vector<8x1xf32> -> vector<8x1xf32>
    %58 = vector.broadcast %57 : vector<8x1xf32> to vector<8x8xf32>
    %59 = arith.mulf %54, %58 : vector<8x8xf32>
    %cst_26 = arith.constant dense<0.000000e+00> : vector<8x8xf32>
    %60 = tpu.matmul %59, %43, %cst_26 {dimension_numbers = #tpu.dot_dimension_numbers<[1], [0], [0], [1], [0, 0, 1, 1], [], []>} : vector<8x8xf32>, vector<8x8xf32>, vector<8x8xf32> -> vector<8x8xf32>
    %c8 = arith.constant 8 : index
    %c0_27 = arith.constant 0 : index
    %61 = vector.load %arg5[%c8, %c0_27] : memref<32x32xf32, #tpu.memory_space<vmem>>, vector<8x32xf32>
    %cst_28 = arith.constant dense<0.000000e+00> : vector<8x32xf32>
    %62 = tpu.matmul %60, %61, %cst_28 {dimension_numbers = #tpu.dot_dimension_numbers<[1], [0], [0], [1], [0, 0, 1, 1], [], []>} : vector<8x8xf32>, vector<8x32xf32>, vector<8x32xf32> -> vector<8x32xf32>
    %63 = arith.addf %40, %62 : vector<8x32xf32>
    %64 = vector.extract_strided_slice %6 {offsets = [0, 16], sizes = [8, 8], strides = [1, 1]} : vector<8x96xf32> to vector<8x8xf32>
    %65 = vector.extract_strided_slice %6 {offsets = [0, 48], sizes = [8, 8], strides = [1, 1]} : vector<8x96xf32> to vector<8x8xf32>
    %66 = vector.extract_strided_slice %6 {offsets = [0, 80], sizes = [8, 8], strides = [1, 1]} : vector<8x96xf32> to vector<8x8xf32>
    %67 = tpu.transpose %65, [1, 0] : vector<8x8xf32> -> vector<8x8xf32>
    %cst_29 = arith.constant dense<0.000000e+00> : vector<8x8xf32>
    %68 = tpu.matmul %64, %67, %cst_29 {dimension_numbers = #tpu.dot_dimension_numbers<[1], [0], [0], [1], [0, 0, 1, 1], [], []>} : vector<8x8xf32>, vector<8x8xf32>, vector<8x8xf32> -> vector<8x8xf32>
    %cst_30 = arith.constant 0.353553385 : f32
    %69 = vector.broadcast %cst_30 : f32 to vector<8x8xf32>
    %70 = arith.mulf %68, %69 : vector<8x8xf32>
    %71 = vector.broadcast %13 : vector<1x8xf32> to vector<8x8xf32>
    %72 = arith.addf %70, %71 : vector<8x8xf32>
    %cst_31 = arith.constant dense<0xFF800000> : vector<8xf32>
    %73 = vector.multi_reduction <maximumf>, %72, %cst_31 [1] : vector<8x8xf32> to vector<8xf32>
    %74 = vector.shape_cast %73 : vector<8xf32> to vector<8x1xf32>
    %75 = vector.broadcast %74 : vector<8x1xf32> to vector<8x8xf32>
    %76 = arith.subf %72, %75 : vector<8x8xf32>
    %77 = math.exp %76 : vector<8x8xf32>
    %cst_32 = arith.constant dense<0.000000e+00> : vector<8xf32>
    %78 = vector.multi_reduction <add>, %77, %cst_32 [1] : vector<8x8xf32> to vector<8xf32>
    %79 = vector.shape_cast %78 : vector<8xf32> to vector<8x1xf32>
    %80 = tpu.reciprocal %79 {approx = true} : vector<8x1xf32> -> vector<8x1xf32>
    %81 = vector.broadcast %80 : vector<8x1xf32> to vector<8x8xf32>
    %82 = arith.mulf %77, %81 : vector<8x8xf32>
    %cst_33 = arith.constant dense<0.000000e+00> : vector<8x8xf32>
    %83 = tpu.matmul %82, %66, %cst_33 {dimension_numbers = #tpu.dot_dimension_numbers<[1], [0], [0], [1], [0, 0, 1, 1], [], []>} : vector<8x8xf32>, vector<8x8xf32>, vector<8x8xf32> -> vector<8x8xf32>
    %c16 = arith.constant 16 : index
    %c0_34 = arith.constant 0 : index
    %84 = vector.load %arg5[%c16, %c0_34] : memref<32x32xf32, #tpu.memory_space<vmem>>, vector<8x32xf32>
    %cst_35 = arith.constant dense<0.000000e+00> : vector<8x32xf32>
    %85 = tpu.matmul %83, %84, %cst_35 {dimension_numbers = #tpu.dot_dimension_numbers<[1], [0], [0], [1], [0, 0, 1, 1], [], []>} : vector<8x8xf32>, vector<8x32xf32>, vector<8x32xf32> -> vector<8x32xf32>
    %86 = arith.addf %63, %85 : vector<8x32xf32>
    %87 = vector.extract_strided_slice %6 {offsets = [0, 24], sizes = [8, 8], strides = [1, 1]} : vector<8x96xf32> to vector<8x8xf32>
    %88 = vector.extract_strided_slice %6 {offsets = [0, 56], sizes = [8, 8], strides = [1, 1]} : vector<8x96xf32> to vector<8x8xf32>
    %89 = vector.extract_strided_slice %6 {offsets = [0, 88], sizes = [8, 8], strides = [1, 1]} : vector<8x96xf32> to vector<8x8xf32>
    %90 = tpu.transpose %88, [1, 0] : vector<8x8xf32> -> vector<8x8xf32>
    %cst_36 = arith.constant dense<0.000000e+00> : vector<8x8xf32>
    %91 = tpu.matmul %87, %90, %cst_36 {dimension_numbers = #tpu.dot_dimension_numbers<[1], [0], [0], [1], [0, 0, 1, 1], [], []>} : vector<8x8xf32>, vector<8x8xf32>, vector<8x8xf32> -> vector<8x8xf32>
    %cst_37 = arith.constant 0.353553385 : f32
    %92 = vector.broadcast %cst_37 : f32 to vector<8x8xf32>
    %93 = arith.mulf %91, %92 : vector<8x8xf32>
    %94 = vector.broadcast %13 : vector<1x8xf32> to vector<8x8xf32>
    %95 = arith.addf %93, %94 : vector<8x8xf32>
    %cst_38 = arith.constant dense<0xFF800000> : vector<8xf32>
    %96 = vector.multi_reduction <maximumf>, %95, %cst_38 [1] : vector<8x8xf32> to vector<8xf32>
    %97 = vector.shape_cast %96 : vector<8xf32> to vector<8x1xf32>
    %98 = vector.broadcast %97 : vector<8x1xf32> to vector<8x8xf32>
    %99 = arith.subf %95, %98 : vector<8x8xf32>
    %100 = math.exp %99 : vector<8x8xf32>
    %cst_39 = arith.constant dense<0.000000e+00> : vector<8xf32>
    %101 = vector.multi_reduction <add>, %100, %cst_39 [1] : vector<8x8xf32> to vector<8xf32>
    %102 = vector.shape_cast %101 : vector<8xf32> to vector<8x1xf32>
    %103 = tpu.reciprocal %102 {approx = true} : vector<8x1xf32> -> vector<8x1xf32>
    %104 = vector.broadcast %103 : vector<8x1xf32> to vector<8x8xf32>
    %105 = arith.mulf %100, %104 : vector<8x8xf32>
    %cst_40 = arith.constant dense<0.000000e+00> : vector<8x8xf32>
    %106 = tpu.matmul %105, %89, %cst_40 {dimension_numbers = #tpu.dot_dimension_numbers<[1], [0], [0], [1], [0, 0, 1, 1], [], []>} : vector<8x8xf32>, vector<8x8xf32>, vector<8x8xf32> -> vector<8x8xf32>
    %c24 = arith.constant 24 : index
    %c0_41 = arith.constant 0 : index
    %107 = vector.load %arg5[%c24, %c0_41] : memref<32x32xf32, #tpu.memory_space<vmem>>, vector<8x32xf32>
    %cst_42 = arith.constant dense<0.000000e+00> : vector<8x32xf32>
    %108 = tpu.matmul %106, %107, %cst_42 {dimension_numbers = #tpu.dot_dimension_numbers<[1], [0], [0], [1], [0, 0, 1, 1], [], []>} : vector<8x8xf32>, vector<8x32xf32>, vector<8x32xf32> -> vector<8x32xf32>
    %109 = arith.addf %86, %108 : vector<8x32xf32>
    %110 = arith.addf %1, %109 : vector<8x32xf32>
    %c0_43 = arith.constant 0 : index
    %c0_44 = arith.constant 0 : index
    %111 = vector.load %arg7[%c0_43, %c0_44] : memref<1x32xf32, #tpu.memory_space<vmem>>, vector<1x32xf32>
    %c0_45 = arith.constant 0 : index
    %c0_46 = arith.constant 0 : index
    %112 = vector.load %arg8[%c0_45, %c0_46] : memref<1x32xf32, #tpu.memory_space<vmem>>, vector<1x32xf32>
    %cst_47 = arith.constant dense<0.000000e+00> : vector<8xf32>
    %113 = vector.multi_reduction <add>, %110, %cst_47 [1] : vector<8x32xf32> to vector<8xf32>
    %114 = vector.shape_cast %113 : vector<8xf32> to vector<8x1xf32>
    %cst_48 = arith.constant 3.200000e+01 : f32
    %115 = vector.broadcast %cst_48 : f32 to vector<8x1xf32>
    %116 = arith.divf %114, %115 : vector<8x1xf32>
    %117 = vector.broadcast %116 : vector<8x1xf32> to vector<8x32xf32>
    %118 = arith.subf %110, %117 : vector<8x32xf32>
    %119 = arith.mulf %118, %118 : vector<8x32xf32>
    %cst_49 = arith.constant dense<0.000000e+00> : vector<8xf32>
    %120 = vector.multi_reduction <add>, %119, %cst_49 [1] : vector<8x32xf32> to vector<8xf32>
    %121 = vector.shape_cast %120 : vector<8xf32> to vector<8x1xf32>
    %cst_50 = arith.constant 3.200000e+01 : f32
    %122 = vector.broadcast %cst_50 : f32 to vector<8x1xf32>
    %123 = arith.divf %121, %122 : vector<8x1xf32>
    %124 = vector.broadcast %116 : vector<8x1xf32> to vector<8x32xf32>
    %125 = arith.subf %110, %124 : vector<8x32xf32>
    %cst_51 = arith.constant 9.99999996E-13 : f32
    %126 = vector.broadcast %cst_51 : f32 to vector<8x1xf32>
    %127 = arith.addf %123, %126 : vector<8x1xf32>
    %128 = math.rsqrt %127 : vector<8x1xf32>
    %129 = vector.broadcast %128 : vector<8x1xf32> to vector<8x32xf32>
    %130 = arith.mulf %125, %129 : vector<8x32xf32>
    %131 = vector.broadcast %111 : vector<1x32xf32> to vector<8x32xf32>
    %132 = arith.mulf %130, %131 : vector<8x32xf32>
    %133 = vector.broadcast %112 : vector<1x32xf32> to vector<8x32xf32>
    %134 = arith.addf %132, %133 : vector<8x32xf32>
    %c0_52 = arith.constant 0 : index
    %c0_53 = arith.constant 0 : index
    %135 = vector.load %arg9[%c0_52, %c0_53] : memref<32x64xf32, #tpu.memory_space<vmem>>, vector<32x64xf32>
    %cst_54 = arith.constant dense<0.000000e+00> : vector<8x64xf32>
    %136 = tpu.matmul %134, %135, %cst_54 {dimension_numbers = #tpu.dot_dimension_numbers<[1], [0], [0], [1], [0, 0, 1, 1], [], []>} : vector<8x32xf32>, vector<32x64xf32>, vector<8x64xf32> -> vector<8x64xf32>
    %c0_55 = arith.constant 0 : index
    %c0_56 = arith.constant 0 : index
    %137 = vector.load %arg10[%c0_55, %c0_56] : memref<1x64xf32, #tpu.memory_space<vmem>>, vector<1x64xf32>
    %138 = vector.broadcast %137 : vector<1x64xf32> to vector<8x64xf32>
    %139 = arith.addf %136, %138 : vector<8x64xf32>
    %cst_57 = arith.constant 5.000000e-01 : f32
    %140 = vector.broadcast %cst_57 : f32 to vector<8x64xf32>
    %141 = arith.mulf %140, %139 : vector<8x64xf32>
    %cst_58 = arith.constant 4.471500e-02 : f32
    %142 = vector.broadcast %cst_58 : f32 to vector<8x64xf32>
    %143 = arith.mulf %142, %139 : vector<8x64xf32>
    %144 = arith.mulf %143, %139 : vector<8x64xf32>
    %145 = arith.mulf %144, %139 : vector<8x64xf32>
    %146 = arith.addf %139, %145 : vector<8x64xf32>
    %cst_59 = arith.constant 0.797884583 : f32
    %147 = vector.broadcast %cst_59 : f32 to vector<8x64xf32>
    %148 = arith.mulf %147, %146 : vector<8x64xf32>
    %149 = math.tanh %148 : vector<8x64xf32>
    %cst_60 = arith.constant 1.000000e+00 : f32
    %150 = vector.broadcast %cst_60 : f32 to vector<8x64xf32>
    %151 = arith.addf %150, %149 : vector<8x64xf32>
    %152 = arith.mulf %141, %151 : vector<8x64xf32>
    %c0_61 = arith.constant 0 : index
    %c0_62 = arith.constant 0 : index
    %153 = vector.load %arg11[%c0_61, %c0_62] : memref<64x32xf32, #tpu.memory_space<vmem>>, vector<64x32xf32>
    %cst_63 = arith.constant dense<0.000000e+00> : vector<8x32xf32>
    %154 = tpu.matmul %152, %153, %cst_63 {dimension_numbers = #tpu.dot_dimension_numbers<[1], [0], [0], [1], [0, 0, 1, 1], [], []>} : vector<8x64xf32>, vector<64x32xf32>, vector<8x32xf32> -> vector<8x32xf32>
    %c0_64 = arith.constant 0 : index
    %c0_65 = arith.constant 0 : index
    %155 = vector.load %arg12[%c0_64, %c0_65] : memref<1x32xf32, #tpu.memory_space<vmem>>, vector<1x32xf32>
    %156 = vector.broadcast %155 : vector<1x32xf32> to vector<8x32xf32>
    %157 = arith.addf %154, %156 : vector<8x32xf32>
    %158 = arith.addf %134, %157 : vector<8x32xf32>
    %c0_66 = arith.constant 0 : index
    %c0_67 = arith.constant 0 : index
    %159 = vector.load %arg13[%c0_66, %c0_67] : memref<1x32xf32, #tpu.memory_space<vmem>>, vector<1x32xf32>
    %c0_68 = arith.constant 0 : index
    %c0_69 = arith.constant 0 : index
    %160 = vector.load %arg14[%c0_68, %c0_69] : memref<1x32xf32, #tpu.memory_space<vmem>>, vector<1x32xf32>
    %cst_70 = arith.constant dense<0.000000e+00> : vector<8xf32>
    %161 = vector.multi_reduction <add>, %158, %cst_70 [1] : vector<8x32xf32> to vector<8xf32>
    %162 = vector.shape_cast %161 : vector<8xf32> to vector<8x1xf32>
    %cst_71 = arith.constant 3.200000e+01 : f32
    %163 = vector.broadcast %cst_71 : f32 to vector<8x1xf32>
    %164 = arith.divf %162, %163 : vector<8x1xf32>
    %165 = vector.broadcast %164 : vector<8x1xf32> to vector<8x32xf32>
    %166 = arith.subf %158, %165 : vector<8x32xf32>
    %167 = arith.mulf %166, %166 : vector<8x32xf32>
    %cst_72 = arith.constant dense<0.000000e+00> : vector<8xf32>
    %168 = vector.multi_reduction <add>, %167, %cst_72 [1] : vector<8x32xf32> to vector<8xf32>
    %169 = vector.shape_cast %168 : vector<8xf32> to vector<8x1xf32>
    %cst_73 = arith.constant 3.200000e+01 : f32
    %170 = vector.broadcast %cst_73 : f32 to vector<8x1xf32>
    %171 = arith.divf %169, %170 : vector<8x1xf32>
    %172 = vector.broadcast %164 : vector<8x1xf32> to vector<8x32xf32>
    %173 = arith.subf %158, %172 : vector<8x32xf32>
    %cst_74 = arith.constant 9.99999996E-13 : f32
    %174 = vector.broadcast %cst_74 : f32 to vector<8x1xf32>
    %175 = arith.addf %171, %174 : vector<8x1xf32>
    %176 = math.rsqrt %175 : vector<8x1xf32>
    %177 = vector.broadcast %176 : vector<8x1xf32> to vector<8x32xf32>
    %178 = arith.mulf %173, %177 : vector<8x32xf32>
    %179 = vector.broadcast %159 : vector<1x32xf32> to vector<8x32xf32>
    %180 = arith.mulf %178, %179 : vector<8x32xf32>
    %181 = vector.broadcast %160 : vector<1x32xf32> to vector<8x32xf32>
    %182 = arith.addf %180, %181 : vector<8x32xf32>
    %c0_75 = arith.constant 0 : index
    %c0_76 = arith.constant 0 : index
    %c0_77 = arith.constant 0 : index
    %183 = vector.load %arg15[%c0_75, %c0_76, %c0_77] : memref<1x8x32xf32, #tpu.memory_space<vmem>>, vector<1x8x32xf32>
    %184 = vector.shape_cast %183 : vector<1x8x32xf32> to vector<8x32xf32>
    %185 = vector.shape_cast %182 : vector<8x32xf32> to vector<1x8x32xf32>
    tpu.vector_store %arg15[%c0_75, %c0_76, %c0_77], %185 {strides = array<i32>} : memref<1x8x32xf32, #tpu.memory_space<vmem>>, vector<1x8x32xf32>,
    return
  }
  func.func @transform_0(%arg0: i32) -> (i32, i32, i32) {
    %c0_i32 = arith.constant 0 : i32
    %c0_i32_0 = arith.constant 0 : i32
    %c0_i32_1 = arith.constant 0 : i32
    return %arg0, %c0_i32, %c0_i32_0 : i32, i32, i32
  }
  func.func @transform_1(%arg0: i32) -> (i32, i32, i32) {
    %c0_i32 = arith.constant 0 : i32
    %c0_i32_0 = arith.constant 0 : i32
    %c0_i32_1 = arith.constant 0 : i32
    return %arg0, %c0_i32, %c0_i32_0 : i32, i32, i32
  }
  func.func @transform_2(%arg0: i32) -> (i32, i32) {
    %c0_i32 = arith.constant 0 : i32
    %c0_i32_0 = arith.constant 0 : i32
    %c0_i32_1 = arith.constant 0 : i32
    return %c0_i32, %c0_i32_0 : i32, i32
  }
  func.func @transform_3(%arg0: i32) -> (i32, i32) {
    %c0_i32 = arith.constant 0 : i32
    %c0_i32_0 = arith.constant 0 : i32
    %c0_i32_1 = arith.constant 0 : i32
    return %c0_i32, %c0_i32_0 : i32, i32
  }
  func.func @transform_4(%arg0: i32) -> (i32, i32) {
    %c0_i32 = arith.constant 0 : i32
    %c0_i32_0 = arith.constant 0 : i32
    %c0_i32_1 = arith.constant 0 : i32
    return %c0_i32, %c0_i32_0 : i32, i32
  }
  func.func @transform_5(%arg0: i32) -> (i32, i32) {
    %c0_i32 = arith.constant 0 : i32
    %c0_i32_0 = arith.constant 0 : i32
    %c0_i32_1 = arith.constant 0 : i32
    return %c0_i32, %c0_i32_0 : i32, i32
  }
  func.func @transform_6(%arg0: i32) -> (i32, i32) {
    %c0_i32 = arith.constant 0 : i32
    %c0_i32_0 = arith.constant 0 : i32
    %c0_i32_1 = arith.constant 0 : i32
    return %c0_i32, %c0_i32_0 : i32, i32
  }
  func.func @transform_7(%arg0: i32) -> (i32, i32) {
    %c0_i32 = arith.constant 0 : i32
    %c0_i32_0 = arith.constant 0 : i32
    %c0_i32_1 = arith.constant 0 : i32
    return %c0_i32, %c0_i32_0 : i32, i32
  }
  func.func @transform_8(%arg0: i32) -> (i32, i32) {
    %c0_i32 = arith.constant 0 : i32
    %c0_i32_0 = arith.constant 0 : i32
    %c0_i32_1 = arith.constant 0 : i32
    return %c0_i32, %c0_i32_0 : i32, i32
  }
  func.func @transform_9(%arg0: i32) -> (i32, i32) {
    %c0_i32 = arith.constant 0 : i32
    %c0_i32_0 = arith.constant 0 : i32
    %c0_i32_1 = arith.constant 0 : i32
    return %c0_i32, %c0_i32_0 : i32, i32
  }
  func.func @transform_10(%arg0: i32) -> (i32, i32) {
    %c0_i32 = arith.constant 0 : i32
    %c0_i32_0 = arith.constant 0 : i32
    %c0_i32_1 = arith.constant 0 : i32
    return %c0_i32, %c0_i32_0 : i32, i32
  }
  func.func @transform_11(%arg0: i32) -> (i32, i32) {
    %c0_i32 = arith.constant 0 : i32
    %c0_i32_0 = arith.constant 0 : i32
    %c0_i32_1 = arith.constant 0 : i32
    return %c0_i32, %c0_i32_0 : i32, i32
  }
  func.func @transform_12(%arg0: i32) -> (i32, i32) {
    %c0_i32 = arith.constant 0 : i32
    %c0_i32_0 = arith.constant 0 : i32
    %c0_i32_1 = arith.constant 0 : i32
    return %c0_i32, %c0_i32_0 : i32, i32
  }
  func.func @transform_13(%arg0: i32) -> (i32, i32) {
    %c0_i32 = arith.constant 0 : i32
    %c0_i32_0 = arith.constant 0 : i32
    %c0_i32_1 = arith.constant 0 : i32
    return %c0_i32, %c0_i32_0 : i32, i32
  }
  func.func @transform_14(%arg0: i32) -> (i32, i32, i32) {
    %c0_i32 = arith.constant 0 : i32
    %c0_i32_0 = arith.constant 0 : i32
    %c0_i32_1 = arith.constant 0 : i32
    return %arg0, %c0_i32, %c0_i32_0 : i32, i32, i32
  }
}

</mosaic_0001>

<bundles_post_ra>
// kernel: bert_forward.3
= control target key start
LH: loop header
LB: loop body
LE: loop exit
PB: predicated region body
PF: predicated region fallthrough
CT: control target
= control target key end

     0   :  { %s386_s18 = smov 0   ;;  %s425_s0 = inlined_call_operand.vmem [shape: f32[2,8,32], index: 0, kind: input, shape index: {}]   ;;  %s426_s1 = inlined_call_operand.vmem [shape: f32[8,32], index: 1, kind: input, shape index: {}]   ;;  %s427_s2 = inlined_call_operand.vmem [shape: f32[1,32], index: 2, kind: input, shape index: {}]   ;;  %s428_s3 = inlined_call_operand.vmem [shape: f32[1,32], index: 3, kind: input, shape index: {}]   ;;  %s429_s4 = inlined_call_operand.vmem [shape: f32[1,32], index: 4, kind: input, shape index: {}]   ;;  %s430_s5 = inlined_call_operand.vmem [shape: f32[2,8,32], index: 5, kind: output, shape index: {}]  }
   0x1 LB: > { %s322_s19 = sadd.s32 4294967295, %s353_s18   ;;  %p326_p0 = scmp.ge.s32.totalorder %s353_s18, 1  ;;  %s353_s18 = sphi %s386_s18, %s15_s18  }
   0x2   : > { %p186_p1 = scmp.lt.s32.totalorder %s353_s18, 3 }
   0x4   : > { %p187_p2 = pnand %p326_p0, %p186_p1 }
   0x5   : > { %p212_p3 = scmp.lt.s32.totalorder (!%p187_p2), %s322_s19, 1 }
   0x6   : > { %190 = sbr.rel (%p187_p2) target bundleno = 288 (0x120), region = 40 }
   0xb   : > { %s432_s19 = smov (!%p212_p3, %s322_s19), 1  ;;  %v221_v0 = vld [vmem:[%s426_s1] sm:$0xff]  ;;  %vm230_vm0 = vcmask 261120   ;;  %v355_v6 = vmov 32.0  }
   0xc   : > { %s327_s20 = sshll.u32 %s432_s19, 3  ;;  %v340_v1 = vld [vmem:[%s427_s2] ss:$0 sm:$0xff]  ;;  %343 = vrcp.f32 %v355_v6 }
   0xd   : > { %s215_s25 = scalar_lea.vmem %s425_s0, %s327_s20  ;;  %v341_v27 = vld [vmem:[%s428_s3] ss:$0 sm:$0xff]  ;;  %s219_s9 = scalar_lea.vmem %s430_s5, %s327_s20 }
   0xe   : > { %v220_v2 = vld [vmem:[%s215_s25] sm:$0xff] }
   0xf   : > { %v222_v3 = vadd.f32 %v221_v0, %v220_v2  ;;  %v342_v29 = vld [vmem:[%s429_s4] ss:$0 sm:$0xff] }
  0x11   : > { %v227_v4 = vadd.f32 %v340_v1, %v222_v3 }
  0x12   : > { %v344_v7 = vpop.eup %343 }
  0x13   : > { %v231_v5 = vsel %vm230_vm0, %v227_v4, 0.0  ;;  %v235_v8 = vmul.f32 32.0, %v344_v7  ;;  %vm239_vm1 = vweird.f32 %v344_v7 }
  0x14   : > { %232 = vadd.xlane.f32.xlu0 %v231_v5 }
  0x15   : > { %v236_v9 = vsub.f32 1.0, %v235_v8 }
  0x17   : > { %v237_v10 = vmul.f32 %v344_v7, %v236_v9 }
  0x19   : > { %v238_v11 = vadd.f32 %v344_v7, %v237_v10 }
  0x1b   : > { %v240_v12 = vsel %vm239_vm1, %v344_v7, %v238_v11 }
  0x87   : > { %v233_v13 = vpop.xlane.xlu0 %232 }
  0x88   : > { %v241_v14 = vmul.f32 %v240_v12, %v233_v13 }
  0x8a   : > { %v242_v15 = vsub.f32 %v227_v4, %v241_v14 }
  0x8c   : > { %v243_v16 = vmul.f32 %v242_v15, %v242_v15 }
  0x8e   : > { %v244_v17 = vsel %vm230_vm0, %v243_v16, 0.0 }
  0x8f   : > { %245 = vadd.xlane.f32.xlu0 %v244_v17 }
 0x102   : > { %v246_v18 = vpop.xlane.xlu0 %245 }
 0x103   : > { %v247_v19 = vmul.f32 %v246_v18, %v240_v12 }
 0x105   : > { %v248_v20 = vadd.f32 1e-12, %v247_v19 }
 0x107   : > { %345 = vrsqrt.f32 %v248_v20  ;;  %vm255_vm3 = vweird.f32 %v248_v20 }
 0x10d   : > { %v346_v21 = vpop.eup %345 }
 0x10e   : > { %v250_v22 = vmul.f32 %v346_v21, %v248_v20  ;;  %vm256_vm2 = vweird.f32 %v346_v21 }
 0x10f   : > { %vm257_vm4 = vmor %vm255_vm3, %vm256_vm2 }
 0x110   : > { %v251_v23 = vmul.f32 %v346_v21, %v250_v22 }
 0x112   : > { %v252_v24 = vmul.f32 0.5, %v251_v23 }
 0x114   : > { %v253_v25 = vsub.f32 1.5, %v252_v24 }
 0x116   : > { %v254_v26 = vmul.f32 %v346_v21, %v253_v25 }
 0x118   : > { %v258_v28 = vsel %vm257_vm4, %v346_v21, %v254_v26 }
 0x119   : > { %v259_v30 = vmul.f32 %v258_v28, %v242_v15 }
 0x11b   : > { %v263_v31 = vmul.f32 %v341_v27, %v259_v30 }
 0x11d   : > { %v267_v32 = vadd.f32 %v342_v29, %v263_v31 }
 0x11f   : > { %268 = vst.msk [vmem:[%s219_s9] sm:$0xff] %vm230_vm0, %v267_v32 }
 0x120 PF: > { %s15_s18 = sadd.s32 1, %s353_s18  }
 0x121   : > { %p12_p4 = scmp.ge.s32.totalorder %s15_s18, 4  }
 0x123   :  { %14 = sbr.rel (!%p12_p4) target bundleno = 1 (0x1), region = 70 }

// kernel: bert_forward.4
= control target key start
LH: loop header
LB: loop body
LE: loop exit
PB: predicated region body
PF: predicated region fallthrough
CT: control target
= control target key end

     0   :  { %s1278_s29 = smov 0   ;;  %s1451_s0 = inlined_call_operand.vmem [shape: f32[2,8,32], index: 0, kind: input, shape index: {}]   ;;  %s1452_s1 = inlined_call_operand.vmem [shape: s32[2,1,8], index: 1, kind: input, shape index: {}]   ;;  %s1453_s2 = inlined_call_operand.vmem [shape: f32[32,96], index: 2, kind: input, shape index: {}]   ;;  %s1454_s3 = inlined_call_operand.vmem [shape: f32[1,96], index: 3, kind: input, shape index: {}]   ;;  %s1455_s4 = inlined_call_operand.vmem [shape: f32[32,32], index: 4, kind: input, shape index: {}]   ;;  %s1456_s5 = inlined_call_operand.vmem [shape: f32[1,32], index: 5, kind: input, shape index: {}]   ;;  %s1457_s6 = inlined_call_operand.vmem [shape: f32[1,32], index: 6, kind: input, shape index: {}]   ;;  %s1458_s7 = inlined_call_operand.vmem [shape: f32[1,32], index: 7, kind: input, shape index: {}]   ;;  %s1459_s8 = inlined_call_operand.vmem [shape: f32[32,64], index: 8, kind: input, shape index: {}]   ;;  %s1460_s9 = inlined_call_operand.vmem [shape: f32[1,64], index: 9, kind: input, shape index: {}]   ;;  %s1461_s10 = inlined_call_operand.vmem [shape: f32[64,32], index: 10, kind: input, shape index: {}]   ;;  %s1462_s11 = inlined_call_operand.vmem [shape: f32[1,32], index: 11, kind: input, shape index: {}]   ;;  %s1463_s12 = inlined_call_operand.vmem [shape: f32[1,32], index: 12, kind: input, shape index: {}]   ;;  %s1464_s13 = inlined_call_operand.vmem [shape: f32[1,32], index: 13, kind: input, shape index: {}]   ;;  %s1465_s14 = inlined_call_operand.vmem [shape: f32[2,8,32], index: 14, kind: output, shape index: {}]  }
   0x1 LB: > { %s1101_s30 = sadd.s32 4294967295, %s1188_s29   ;;  %p1105_p0 = scmp.ge.s32.totalorder %s1188_s29, 1  ;;  %s1188_s29 = sphi %s1278_s29, %s24_s29  }
   0x2   : > { %p419_p1 = scmp.lt.s32.totalorder %s1188_s29, 3 }
   0x4   : > { %p420_p2 = pnand %p1105_p0, %p419_p1 }
   0x5   : > { %p466_p3 = scmp.lt.s32.totalorder (!%p420_p2), %s1101_s30, 1  ;;  %s1190_s15 = smov (!%p420_p2), 88  }
   0x6   : > { %423 = sbr.rel (%p420_p2) target bundleno = 2671 (0xa6f), region = 76  ;;  %s1191_s16 = smov (!%p420_p2), 96  }
   0x7   : > { %s1192_s17 = smov (!%p420_p2), 120   ;;  %s1194_s21 = smov (!%p420_p2), 56  }
   0x8   : > { %s1195_s22 = smov (!%p420_p2), 112   ;;  %s1196_s24 = smov (!%p420_p2), 104  }
   0x9   : > { %s1197_s27 = smov (!%p420_p2), 64   ;;  %s1198_s28 = smov (!%p420_p2), 80  }
   0xa   : > { %s1200_s18 = smov (!%p420_p2), 48   ;;  %s1201_s19 = smov (!%p420_p2), 40  }
   0xb   : > { %v481_v0 = vld [vmem:[%s1453_s2 + $0x18] sm:$0xff]  ;;  %v480_v1 = vld [vmem:[%s1453_s2 + $0x10] sm:$0xff]  ;;  %v479_v2 = vld [vmem:[%s1453_s2 + $0x8] sm:$0xff]  ;;  %s1467_s30 = smov (!%p466_p3, %s1101_s30), 1  ;;  %vm486_vm0 = vcmask 261120   ;;  %vm521_vm1 = vcmask 64512  }
   0xc   : > { %502 = vmatpush.msra.mxu0 %v481_v0  ;;  %v478_v3 = vld [vmem:[%s1453_s2] sm:$0xff]  ;;  %s1106_s23 = sshll.u32 %s1467_s30, 3  ;;  %s472_s20 = scalar_lea.vmem %s1452_s1, %s1467_s30  ;;  %v1193_v10 = vmov 0.0   ;;  %v680_v42 = vld [vmem:[%s1455_s4 + $0x8] sm:$0xff]  ;;  %vm981_vm7 = vcmask 523264  }
   0xd   : > { %s469_s26 = scalar_lea.vmem %s1451_s0, %s1106_s23  ;;  %v1150_v5 = vld [vmem:[%s1454_s3] ss:$0 sm:$0xff]  ;;  %699 = vmatpush.msra.mxu1 %v680_v42 }
   0xe   : > { %503 = vmatpush.msra.mxu0 %v480_v1  ;;  %v1306_v4 = vld [vmem:[%s469_s26] sm:$0xff]  ;;  %s476_s26 = scalar_lea.vmem %s1465_s14, %s1106_s23 }
   0xf   : > { %v510_v9 = vld [vmem:[%s472_s20] sm:$0x1] }
  0x10   : > { %504 = vmatpush.msra.mxu0 %v479_v2  ;;  %vm511_vm2 = vcmp.eq.s32.totalorder %v510_v9, 0  ;;  %v588_v17 = vld [vmem:[%s1455_s4] sm:$0xff] }
  0x11   : > { %v512_v11 = vsel %vm511_vm2, -1e+09, %v1193_v10  ;;  %607 = vmatpush.msra.mxu3 %v588_v17 }
  0x12   : > { %505 = vmatpush.msra.mxu0 %v478_v3  ;;  %v1325_v12 = vperm.slane %v512_v11, 0  ;;  %v772_v11 = vld [vmem:[%s1455_s4 + $0x10] sm:$0xff] }
  0x13   : > { %1108 = vmatmul.msk.f32.vlgmr.msra.gmra.mxu0 %vm486_vm0, %v1306_v4 }
  0x90   : > { %v507_v6 = vpop.f32.mrf.mxu0 }
  0x91   : > { %v1313_v7 = vadd.f32 %v1150_v5, %v507_v6 }
  0x93   : > { %615 = vrot.lane.b32.xlu2 %v1313_v7, %s1190_s15  ;;  %519 = vrot.lane.b32.xlu0 %v1313_v7, %s1191_s16  ;;  %s1199_s15 = smov 72  }
  0x9b   : > { %613 = vrot.lane.b32.xlu2 %v1313_v7, %s1192_s17 }
  0xed   : > { %v616_v26 = vpop.permute.xlu2 %615 }
  0xf5   : > { %v614_v29 = vpop.permute.xlu2 %613 }
 0x105   : > { %v520_v8 = vpop.permute.xlu0 %519 }
 0x106   : > { %1109 = vmatpush.xpose.msk.msrb.mxu0 %vm521_vm1, %v520_v8 }
 0x109   : > { %1110 = vmatmul.msk.f32.vlgmr.msrb.gmra.mxu0 %vm521_vm1, %v1313_v7 }
 0x186   : > { %v543_v13 = vpop.f32.mrf.mxu0 }
 0x187   : > { %v546_v14 = vmul.f32 0.35355338, %v543_v13 }
 0x189   : > { %v550_v15 = vadd.f32 %v1325_v12, %v546_v14 }
 0x18b   : > { %v551_v16 = vsel %vm521_vm1, %v550_v15, -inf }
 0x18c   : > { %552 = vmax.xlane.f32.xlu0 %v551_v16 }
 0x1a0   : > { %654 = vrot.lane.b32.xlu0 %v1313_v7, %s1194_s21 }
 0x1a8   : > { %705 = vrot.lane.b32.xlu0 %v1313_v7, %s1195_s22 }
 0x1b0   : > { %797 = vrot.lane.b32.xlu0 %v1313_v7, %s1196_s24 }
 0x1ff   : > { %v553_v18 = vpop.xlane.xlu0 %552 }
 0x200   : > { %v554_v19 = vsub.f32 %v550_v15, %v553_v18  ;;  %v1151_v18 = vld [vmem:[%s1456_s5] ss:$0 sm:$0xff] }
 0x202   : > { %v555_v20 = vmul.f32 1.442695, %v554_v19 }
 0x204   : > { %1158 = vpow2.f32 %v555_v20 }
 0x20a   : > { %v1159_v21 = vpop.eup %1158 }
 0x20b   : > { %v557_v22 = vsel %vm521_vm1, %v1159_v21, 0.0 }
 0x20c   : > { %558 = vadd.xlane.f32.xlu1 %v557_v22 }
 0x212   : > { %v655_v23 = vpop.permute.xlu0 %654 }
 0x213   : > { %675 = vmatpush.msrb.mxu3 %v655_v23 }
 0x21a   : > { %v706_v40 = vpop.permute.xlu0 %705 }
 0x222   : > { %v798_v58 = vpop.permute.xlu0 %797 }
 0x225   : > { %562 = vrot.lane.b32.xlu1 %v1313_v7, %s1197_s27 }
 0x27f   : > { %v559_v24 = vpop.xlane.xlu1 %558 }
 0x280   : > { %1160 = vrcp.f32 %v559_v24 }
 0x286   : > { %v1161_v25 = vpop.eup %1160 }
 0x287   : > { %v561_v28 = vmul.f32 %v1161_v25, %v1159_v21 }
 0x297   : > { %v563_v27 = vpop.permute.xlu1 %562 }
 0x298   : > { %583 = vmatpush.msra.mxu2 %v563_v27  ;;  %v1202_v27 = vmov 32.0  }
 0x299   : > { %1111 = vmatmul.msk.f32.vlgmr.msra.gmra.mxu2 %vm521_vm1, %v561_v28 }
 0x29a   : > { %1113 = vmatpush.xpose.msk.msrb.mxu2 %vm521_vm1, %v616_v26 }
 0x2a1   : > { %1114 = vmatmul.msk.f32.vlgmr.msrb.gmra.mxu2 %vm521_vm1, %v614_v29 }
 0x31c   : > { %v585_v30 = vpop.f32.mrf.mxu2 }
 0x31d   : > { %1112 = vmatmul.msk.f32.vlgmr.msra.gmra.mxu3 %vm521_vm1, %v585_v30 }
 0x31e   : > { %791 = vmatpush.msra.mxu3 %v772_v11 }
 0x324   : > { %v638_v31 = vpop.f32.mrf.mxu2 }
 0x325   : > { %v641_v32 = vmul.f32 0.35355338, %v638_v31 }
 0x327   : > { %v642_v33 = vadd.f32 %v641_v32, %v1325_v12 }
 0x329   : > { %v643_v34 = vsel %vm521_vm1, %v642_v33, -inf }
 0x32a   : > { %644 = vmax.xlane.f32.xlu2 %v643_v34 }
 0x342   : > { %707 = vrot.lane.b32.xlu2 %v1313_v7, %s1198_s28 }
 0x39d   : > { %v645_v35 = vpop.xlane.xlu2 %644 }
 0x39e   : > { %v646_v36 = vsub.f32 %v642_v33, %v645_v35 }
 0x3a0   : > { %v647_v37 = vmul.f32 1.442695, %v646_v36  ;;  %v609_v53 = vpop.f32.mrf.mxu3 }
 0x3a1   : > { %v612_v19 = vadd.f32 %v1151_v18, %v609_v53 }
 0x3a2   : > { %1162 = vpow2.f32 %v647_v37 }
 0x3a5   : > { %v708_v38 = vpop.permute.xlu2 %707 }
 0x3a6   : > { %1117 = vmatpush.xpose.msk.msra.mxu0 %vm521_vm1, %v708_v38  ;;  %v932_v38 = vld [vmem:[%s1459_s8 + $0x18] sm:$0xff] }
 0x3a8   : > { %v1163_v39 = vpop.eup %1162 }
 0x3a9   : > { %1118 = vmatmul.msk.f32.vlgmr.msra.gmra.mxu0 %vm521_vm1, %v706_v40  ;;  %v649_v41 = vsel %vm521_vm1, %v1163_v39, 0.0  ;;  %v930_v40 = vld [vmem:[%s1459_s8 + $0x8] sm:$0xff] }
 0x3aa   : > { %650 = vadd.xlane.f32.xlu1 %v649_v41  ;;  %v929_v41 = vld [vmem:[%s1459_s8] sm:$0xff] }
 0x3c3   : > { %799 = vrot.lane.b32.xlu1 %v1313_v7, %s1199_s15 }
 0x41d   : > { %v651_v43 = vpop.xlane.xlu1 %650 }
 0x41e   : > { %1164 = vrcp.f32 %v651_v43 }
 0x424   : > { %v1165_v44 = vpop.eup %1164 }
 0x425   : > { %v653_v45 = vmul.f32 %v1165_v44, %v1163_v39  ;;  %v931_v39 = vld [vmem:[%s1459_s8 + $0x10] sm:$0xff] }
 0x426   : > { %v730_v46 = vpop.f32.mrf.mxu0 }
 0x427   : > { %v733_v47 = vmul.f32 0.35355338, %v730_v46  ;;  %1115 = vmatmul.msk.f32.vlgmr.msrb.gmra.mxu3 %vm521_vm1, %v653_v45 }
 0x428   : > { %952 = vmatpush.msrb.mxu3 %v932_v38 }
 0x429   : > { %v734_v48 = vadd.f32 %v733_v47, %v1325_v12 }
 0x42a   : > { %953 = vmatpush.msrb.mxu3 %v931_v39 }
 0x42b   : > { %v735_v49 = vsel %vm521_vm1, %v734_v48, -inf }
 0x42c   : > { %736 = vmax.xlane.f32.xlu2 %v735_v49  ;;  %954 = vmatpush.msrb.mxu3 %v930_v40 }
 0x42e   : > { %955 = vmatpush.msrb.mxu3 %v929_v41 }
 0x435   : > { %v800_v50 = vpop.permute.xlu1 %799 }
 0x436   : > { %1121 = vmatpush.xpose.msk.msrb.mxu1 %vm521_vm1, %v800_v50 }
 0x49f   : > { %v737_v51 = vpop.xlane.xlu2 %736 }
 0x4a0   : > { %v738_v52 = vsub.f32 %v734_v48, %v737_v51  ;;  %v1152_v51 = vld [vmem:[%s1457_s6] ss:$0 sm:$0xff] }
 0x4a2   : > { %v739_v54 = vmul.f32 1.442695, %v738_v52 }
 0x4a4   : > { %1166 = vpow2.f32 %v739_v54  ;;  %v1153_v54 = vld [vmem:[%s1458_s7] ss:$0 sm:$0xff] }
 0x4aa   : > { %v1167_v55 = vpop.eup %1166  ;;  %v677_v56 = vpop.f32.mrf.mxu3 }
 0x4ab   : > { %1116 = vmatmul.msk.f32.vlgmr.msra.gmra.mxu1 %vm521_vm1, %v677_v56  ;;  %v741_v57 = vsel %vm521_vm1, %v1167_v55, 0.0 }
 0x4ac   : > { %742 = vadd.xlane.f32.xlu1 %v741_v57  ;;  %v976_v57 = vld [vmem:[%s1461_s10 + $0x38] sm:$0xff] }
 0x4ad   : > { %993 = vmatpush.msra.mxu1 %v976_v57 }
 0x4b3   : > { %1122 = vmatmul.msk.f32.vlgmr.msrb.gmra.mxu1 %vm521_vm1, %v798_v58  ;;  %v975_v58 = vld [vmem:[%s1461_s10 + $0x30] sm:$0xff] }
 0x4b4   : > { %994 = vmatpush.msra.mxu1 %v975_v58 }
 0x51f   : > { %v743_v3 = vpop.xlane.xlu1 %742 }
 0x528   : > { %v701_v59 = vpop.f32.mrf.mxu1 }
 0x529   : > { %v704_v21 = vadd.f32 %v701_v59, %v612_v19  ;;  %v974_v59 = vld [vmem:[%s1461_s10 + $0x28] sm:$0xff] }
 0x52a   : > { %995 = vmatpush.msra.mxu1 %v974_v59 }
 0x530   : > { %v822_v60 = vpop.f32.mrf.mxu1 }
 0x531   : > { %v825_v61 = vmul.f32 0.35355338, %v822_v60  ;;  %v973_v60 = vld [vmem:[%s1461_s10 + $0x20] sm:$0xff] }
 0x532   : > { %996 = vmatpush.msra.mxu1 %v973_v60 }
 0x533   : > { %v826_v62 = vadd.f32 %v825_v61, %v1325_v12  ;;  %v972_v61 = vld [vmem:[%s1461_s10 + $0x18] sm:$0xff] }
 0x534   : > { %997 = vmatpush.msra.mxu1 %v972_v61 }
 0x535   : > { %v827_v63 = vsel %vm521_vm1, %v826_v62, -inf }
 0x536   : > { %828 = vmax.xlane.f32.xlu0 %v827_v63  ;;  %v970_v63 = vld [vmem:[%s1461_s10 + $0x8] sm:$0xff] }
 0x54a   : > { %746 = vrot.lane.b32.xlu0 %v1313_v7, %s1200_s18 }
 0x5a9   : > { %v829_v0 = vpop.xlane.xlu0 %828 }
 0x5aa   : > { %v830_v1 = vsub.f32 %v826_v62, %v829_v0  ;;  %v971_v62 = vld [vmem:[%s1461_s10 + $0x10] sm:$0xff]  ;;  %v969_v0 = vld [vmem:[%s1461_s10] sm:$0xff] }
 0x5ab   : > { %998 = vmatpush.msra.mxu1 %v971_v62 }
 0x5ac   : > { %v831_v2 = vmul.f32 1.442695, %v830_v1  ;;  %v1154_v1 = vld [vmem:[%s1460_s9] ss:$0 sm:$0xff] }
 0x5ad   : > { %999 = vmatpush.msra.mxu1 %v970_v63 }
 0x5ae   : > { %1168 = vpow2.f32 %v831_v2 }
 0x5af   : > { %1170 = vrcp.f32 %v743_v3  ;;  %1000 = vmatpush.msra.mxu1 %v969_v0 }
 0x5b4   : > { %v1169_v5 = vpop.eup %1168 }
 0x5b5   : > { %v833_v6 = vsel %vm521_vm1, %v1169_v5, 0.0  ;;  %v1171_v8 = vpop.eup %1170 }
 0x5b6   : > { %834 = vadd.xlane.f32.xlu2 %v833_v6  ;;  %v745_v9 = vmul.f32 %v1171_v8, %v1167_v55 }
 0x5bc   : > { %v747_v10 = vpop.permute.xlu0 %746 }
 0x5bd   : > { %767 = vmatpush.msra.mxu2 %v747_v10 }
 0x5be   : > { %1119 = vmatmul.msk.f32.vlgmr.msra.gmra.mxu2 %vm521_vm1, %v745_v9 }
 0x5ce   : > { %838 = vrot.lane.b32.xlu2 %v1313_v7, %s1201_s19  ;;  %v864_v7 = vld [vmem:[%s1455_s4 + $0x18] sm:$0xff] }
 0x5cf   : > { %883 = vmatpush.msrb.mxu2 %v864_v7 }
 0x629   : > { %v835_v12 = vpop.xlane.xlu2 %834 }
 0x62a   : > { %1172 = vrcp.f32 %v835_v12 }
 0x62b   : > { %1174 = vrcp.f32 %v1202_v27 }
 0x630   : > { %v1173_v13 = vpop.eup %1172 }
 0x631   : > { %v837_v14 = vmul.f32 %v1173_v13, %v1169_v5  ;;  %v839_v15 = vpop.permute.xlu2 %838  ;;  %v1175_v28 = vpop.eup %1174 }
 0x632   : > { %859 = vmatpush.msrb.mxu0 %v839_v15  ;;  %v896_v29 = vmul.f32 32.0, %v1175_v28  ;;  %vm900_vm3 = vweird.f32 %v1175_v28  ;;  %v1155_v15 = vld [vmem:[%s1462_s11] ss:$0 sm:$0xff] }
 0x633   : > { %1123 = vmatmul.msk.f32.vlgmr.msrb.gmra.mxu0 %vm521_vm1, %v837_v14 }
 0x634   : > { %v897_v30 = vsub.f32 1.0, %v896_v29 }
 0x636   : > { %v898_v31 = vmul.f32 %v1175_v28, %v897_v30 }
 0x638   : > { %v899_v32 = vadd.f32 %v1175_v28, %v898_v31 }
 0x63a   : > { %v1378_v33 = vsel %vm900_vm3, %v1175_v28, %v899_v32 }
 0x641   : > { %v769_v16 = vpop.f32.mrf.mxu2 }
 0x642   : > { %1120 = vmatmul.msk.f32.vlgmr.msra.gmra.mxu3 %vm521_vm1, %v769_v16 }
 0x6b0   : > { %v861_v17 = vpop.f32.mrf.mxu0 }
 0x6b1   : > { %1124 = vmatmul.msk.f32.vlgmr.msrb.gmra.mxu2 %vm521_vm1, %v861_v17 }
 0x6c5   : > { %v793_v20 = vpop.f32.mrf.mxu3 }
 0x6c6   : > { %v796_v22 = vadd.f32 %v793_v20, %v704_v21 }
 0x734   : > { %v885_v23 = vpop.f32.mrf.mxu2 }
 0x735   : > { %v888_v24 = vadd.f32 %v885_v23, %v796_v22 }
 0x737   : > { %v889_v25 = vadd.f32 %v888_v24, %v1306_v4 }
 0x739   : > { %v892_v26 = vsel %vm486_vm0, %v889_v25, 0.0 }
 0x73a   : > { %893 = vadd.xlane.f32.xlu1 %v892_v26 }
 0x7ad   : > { %v894_v34 = vpop.xlane.xlu1 %893 }
 0x7ae   : > { %v902_v35 = vmul.f32 %v1378_v33, %v894_v34  ;;  %v1156_v34 = vld [vmem:[%s1463_s12] ss:$0 sm:$0xff] }
 0x7b0   : > { %v903_v36 = vsub.f32 %v889_v25, %v902_v35 }
 0x7b2   : > { %v904_v37 = vmul.f32 %v903_v36, %v903_v36 }
 0x7b4   : > { %v905_v4 = vsel %vm486_vm0, %v904_v37, 0.0 }
 0x7b5   : > { %906 = vadd.xlane.f32.xlu0 %v905_v4 }
 0x828   : > { %v907_v42 = vpop.xlane.xlu0 %906 }
 0x829   : > { %v908_v43 = vmul.f32 %v907_v42, %v1378_v33 }
 0x82b   : > { %v909_v44 = vadd.f32 1e-12, %v908_v43 }
 0x82d   : > { %1176 = vrsqrt.f32 %v909_v44  ;;  %vm916_vm5 = vweird.f32 %v909_v44 }
 0x833   : > { %v1177_v45 = vpop.eup %1176 }
 0x834   : > { %v911_v46 = vmul.f32 %v1177_v45, %v909_v44  ;;  %vm917_vm4 = vweird.f32 %v1177_v45 }
 0x835   : > { %vm918_vm6 = vmor %vm916_vm5, %vm917_vm4 }
 0x836   : > { %v912_v47 = vmul.f32 %v1177_v45, %v911_v46 }
 0x838   : > { %v913_v48 = vmul.f32 0.5, %v912_v47 }
 0x83a   : > { %v914_v49 = vsub.f32 1.5, %v913_v48 }
 0x83c   : > { %v915_v50 = vmul.f32 %v1177_v45, %v914_v49 }
 0x83e   : > { %v919_v52 = vsel %vm918_vm6, %v1177_v45, %v915_v50 }
 0x83f   : > { %v920_v53 = vmul.f32 %v919_v52, %v903_v36 }
 0x841   : > { %v924_v55 = vmul.f32 %v1152_v51, %v920_v53 }
 0x843   : > { %v928_v56 = vadd.f32 %v1153_v54, %v924_v55 }
 0x845   : > { %1125 = vmatmul.msk.f32.vlgmr.msrb.gmra.mxu3 %vm486_vm0, %v928_v56 }
 0x8c8   : > { %v957_v2 = vpop.f32.mrf.mxu3 }
 0x8c9   : > { %v958_v3 = vadd.f32 %v1154_v1, %v957_v2 }
 0x8cb   : > { %v961_v5 = vmul.f32 0.044715, %v958_v3  ;;  %v960_v12 = vmul.f32 0.5, %v958_v3 }
 0x8cd   : > { %v962_v6 = vmul.f32 %v961_v5, %v958_v3 }
 0x8cf   : > { %v963_v8 = vmul.f32 %v962_v6, %v958_v3 }
 0x8d1   : > { %v964_v9 = vadd.f32 %v963_v8, %v958_v3 }
 0x8d3   : > { %v965_v10 = vmul.f32 0.7978846, %v964_v9 }
 0x8d5   : > { %1178 = vtanh.f32 %v965_v10 }
 0x8db   : > { %v1179_v11 = vpop.eup %1178 }
 0x8dc   : > { %v967_v13 = vadd.f32 1.0, %v1179_v11 }
 0x8de   : > { %v968_v14 = vmul.f32 %v967_v13, %v960_v12 }
 0x8e0   : > { %1126 = vmatmul.msk.f32.vlgmr.msra.gmra.mxu1 %vm981_vm7, %v968_v14 }
 0x95d   : > { %v1002_v16 = vpop.f32.mrf.mxu1 }
 0x95e   : > { %v1003_v7 = vadd.f32 %v1155_v15, %v1002_v16 }
 0x960   : > { %v1005_v17 = vadd.f32 %v1003_v7, %v928_v56 }
 0x962   : > { %v1008_v18 = vsel %vm486_vm0, %v1005_v17, 0.0 }
 0x963   : > { %1009 = vadd.xlane.f32.xlu1 %v1008_v18 }
 0x9d6   : > { %v1010_v19 = vpop.xlane.xlu1 %1009 }
 0x9d7   : > { %v1011_v20 = vmul.f32 %v1010_v19, %v1378_v33 }
 0x9d9   : > { %v1012_v21 = vsub.f32 %v1005_v17, %v1011_v20 }
 0x9db   : > { %v1013_v22 = vmul.f32 %v1012_v21, %v1012_v21 }
 0x9dd   : > { %v1014_v23 = vsel %vm486_vm0, %v1013_v22, 0.0 }
 0x9de   : > { %1015 = vadd.xlane.f32.xlu2 %v1014_v23 }
 0xa51   : > { %v1016_v24 = vpop.xlane.xlu2 %1015 }
 0xa52   : > { %v1017_v25 = vmul.f32 %v1016_v24, %v1378_v33  ;;  %v1157_v33 = vld [vmem:[%s1464_s13] ss:$0 sm:$0xff] }
 0xa54   : > { %v1018_v26 = vadd.f32 1e-12, %v1017_v25 }
 0xa56   : > { %1180 = vrsqrt.f32 %v1018_v26  ;;  %vm1025_vm9 = vweird.f32 %v1018_v26 }
 0xa5c   : > { %v1181_v27 = vpop.eup %1180 }
 0xa5d   : > { %v1020_v28 = vmul.f32 %v1181_v27, %v1018_v26  ;;  %vm1026_vm8 = vweird.f32 %v1181_v27 }
 0xa5e   : > { %vm1027_vm10 = vmor %vm1025_vm9, %vm1026_vm8 }
 0xa5f   : > { %v1021_v29 = vmul.f32 %v1181_v27, %v1020_v28 }
 0xa61   : > { %v1022_v30 = vmul.f32 0.5, %v1021_v29 }
 0xa63   : > { %v1023_v31 = vsub.f32 1.5, %v1022_v30 }
 0xa65   : > { %v1024_v32 = vmul.f32 %v1181_v27, %v1023_v31 }
 0xa67   : > { %v1028_v35 = vsel %vm1027_vm10, %v1181_v27, %v1024_v32 }
 0xa68   : > { %v1029_v36 = vmul.f32 %v1028_v35, %v1012_v21 }
 0xa6a   : > { %v1033_v37 = vmul.f32 %v1156_v34, %v1029_v36 }
 0xa6c   : > { %v1037_v4 = vadd.f32 %v1157_v33, %v1033_v37 }
 0xa6e   : > { %1038 = vst.msk [vmem:[%s476_s26] sm:$0xff] %vm486_vm0, %v1037_v4 }
 0xa6f PF: > { %s24_s29 = sadd.s32 1, %s1188_s29  }
 0xa70   : > { %p21_p4 = scmp.ge.s32.totalorder %s24_s29, 4  }
 0xa72   :  { %23 = sbr.rel (!%p21_p4) target bundleno = 1 (0x1), region = 109 }

// kernel: bert_forward.5
= control target key start
LH: loop header
LB: loop body
LE: loop exit
PB: predicated region body
PF: predicated region fallthrough
CT: control target
= control target key end

     0   :  { %s1621_s0 = inlined_call_operand.vmem [shape: f32[2,8,32], index: 0, kind: input, shape index: {}]   ;;  %s1622_s1 = inlined_call_operand.vmem [shape: s32[2,1,8], index: 1, kind: input, shape index: {}]   ;;  %s1623_s2 = inlined_call_operand.vmem [shape: f32[32,96], index: 2, kind: input, shape index: {}]   ;;  %s1624_s3 = inlined_call_operand.vmem [shape: f32[1,96], index: 3, kind: input, shape index: {}]   ;;  %s1625_s4 = inlined_call_operand.vmem [shape: f32[32,32], index: 4, kind: input, shape index: {}]   ;;  %s1626_s5 = inlined_call_operand.vmem [shape: f32[1,32], index: 5, kind: input, shape index: {}]   ;;  %s1627_s6 = inlined_call_operand.vmem [shape: f32[1,32], index: 6, kind: input, shape index: {}]   ;;  %s1628_s7 = inlined_call_operand.vmem [shape: f32[1,32], index: 7, kind: input, shape index: {}]   ;;  %s1629_s8 = inlined_call_operand.vmem [shape: f32[32,64], index: 8, kind: input, shape index: {}]   ;;  %s1630_s9 = inlined_call_operand.vmem [shape: f32[1,64], index: 9, kind: input, shape index: {}]   ;;  %s1631_s10 = inlined_call_operand.vmem [shape: f32[64,32], index: 10, kind: input, shape index: {}]   ;;  %s1632_s11 = inlined_call_operand.vmem [shape: f32[1,32], index: 11, kind: input, shape index: {}]   ;;  %s1633_s12 = inlined_call_operand.vmem [shape: f32[1,32], index: 12, kind: input, shape index: {}]   ;;  %s1634_s13 = inlined_call_operand.vmem [shape: f32[1,32], index: 13, kind: input, shape index: {}]   ;;  %s1635_s14 = inlined_call_operand.hbm [shape: f32[2,8,32], index: 14, kind: output, shape index: {}]  }
   0x1   :  { %1640 = sst [smem:[#allocation9_spill]] %s1621_s0 }
   0x2   :  { %19 = vsyncpa [#allocation3], 0 }
   0x3   :  { %21 = vsyncpa [#allocation3 + $0x1], 0  ;;  %s1388_s29 = smov 0   ;;  %s1390_s30 = smov 0  }
   0x4   :  { %s1392_s15 = smov 0   ;;  %s1394_s16 = smov 0  }
   0x5 LB: > { %1641 = sst [smem:[#allocation5_spill]] %s1294_s15  ;;  %s1409_s17 = sadd.s32 4294967295, %s1298_s16   ;;  %s1298_s16 = sphi %s1394_s16, %s1649_s16   ;;  %s1294_s15 = sphi %s1392_s15, %s1651_s15   ;;  %s1290_s30 = sphi %s1390_s30, %s1653_s30   ;;  %s1286_s29 = sphi %s1388_s29, %s1652_s29  }
   0x6   : > { %s1123_s18 = sadd.s32 4294967294, %s1298_s16   ;;  %s1413_s19 = sadd.s32 1, %s1298_s16  }
   0x7   : > { %1642 = sst [smem:[#allocation6_spill]] %s1413_s19  ;;  %s338_s20 = sadd.s32 1, %s1294_s15 }
   0x8   : > { %s335_s21 = ssub.s32 %s1298_s16, %s1413_s19  ;;  %p348_p0 = scmp.ne.s32.totalorder %s1294_s15, %s1290_s30 }
   0x9   : > { %p336_p1 = scmp.eq.s32.totalorder %s335_s21, 0  ;;  %p349_p2 = scmp.eq.s32.totalorder %s1409_s17, 1 }
   0xa   : > { %p354_p3 = scmp.ne.s32.totalorder %s1290_s30, %s1286_s29  ;;  %p355_p4 = scmp.eq.s32.totalorder %s1123_s18, 1 }
   0xb   : > { %s1424_s22 = scalar_select %p336_p1, %s1294_s15, %s338_s20  }
   0xc   : > { %p1426_p5 = por %p349_p2, %p348_p0  ;;  %p1430_p6 = por %p355_p4, %p354_p3 }
   0xd   : > { %1643 = sst [smem:[#allocation7_spill]] %s1424_s22  ;;  %p1126_p7 = scmp.ge.s32.totalorder %s1298_s16, 1 }
   0xe   : > { %s1645_s24 = scalar_select %p1430_p6, 1, 0 }
   0xf   : > { %p422_p8 = scmp.lt.s32.totalorder %s1298_s16, 3 }
  0x10   : > { %1646 = sst [smem:[#allocation8_spill]] %s1645_s24 }
  0x11   : > { %p423_p9 = pnand %p1126_p7, %p422_p8 }
  0x12   : > { %p470_p10 = scmp.lt.s32.totalorder (!%p423_p9), %s1409_s17, 1  ;;  %s1647_s0 = sld [smem:[#allocation9_spill]] (!%p423_p9) }
  0x13   : > { %426 = sbr.rel (%p423_p9) target bundleno = 2686 (0xa7e), region = 76  ;;  %s1300_s15 = smov (!%p423_p9), 88  }
  0x14   : > { %s1301_s22 = smov (!%p423_p9), 96   ;;  %s1302_s19 = smov (!%p423_p9), 120  }
  0x15   : > { %s1305_s26 = smov (!%p423_p9), 112  }
  0x18   : > { %v481_v0 = vld [vmem:[%s1623_s2 + $0x18] sm:$0xff]  ;;  %v480_v1 = vld [vmem:[%s1623_s2 + $0x10] sm:$0xff]  ;;  %v479_v2 = vld [vmem:[%s1623_s2 + $0x8] sm:$0xff]  ;;  %s471_s21 = scalar_select %p470_p10, %s1409_s17, 1  ;;  %vm486_vm0 = vcmask 261120   ;;  %vm521_vm1 = vcmask 64512  }
  0x19   : > { %502 = vmatpush.msra.mxu0 %v481_v0  ;;  %v478_v3 = vld [vmem:[%s1623_s2] sm:$0xff]  ;;  %v1303_v10 = vmov 0.0   ;;  %v680_v42 = vld [vmem:[%s1625_s4 + $0x8] sm:$0xff]  ;;  %vm981_vm7 = vcmask 523264  }
  0x1a   : > { %s1128_s25 = sshll.u32 %s471_s21, 3  ;;  %v1204_v5 = vld [vmem:[%s1624_s3] ss:$0 sm:$0xff]  ;;  %s476_s20 = scalar_lea.vmem %s1622_s1, %s471_s21  ;;  %699 = vmatpush.msra.mxu1 %v680_v42 }
  0x1b   : > { %503 = vmatpush.msra.mxu0 %v480_v1  ;;  %s473_s24 = scalar_lea.vmem %s1647_s0, %s1128_s25  ;;  %v510_v9 = vld [vmem:[%s476_s20] sm:$0x1]  ;;  %s1304_s25 = smov 56  }
  0x1c   : > { %v1453_v4 = vld [vmem:[%s473_s24] sm:$0xff]  ;;  %vm511_vm2 = vcmp.eq.s32.totalorder %v510_v9, 0  ;;  %s1306_s21 = smov 104   ;;  %s1310_s20 = smov 48  }
  0x1d   : > { %504 = vmatpush.msra.mxu0 %v479_v2  ;;  %v512_v11 = vsel %vm511_vm2, -1e+09, %v1303_v10  ;;  %v588_v17 = vld [vmem:[%s1625_s4] sm:$0xff]  ;;  %s1149_s24 = sshll.u32 %s1409_s17, 3 }
  0x1e   : > { %v1471_v12 = vperm.slane %v512_v11, 0  ;;  %607 = vmatpush.msra.mxu3 %v588_v17  ;;  %v772_v11 = vld [vmem:[%s1625_s4 + $0x10] sm:$0xff] }
  0x1f   : > { %505 = vmatpush.msra.mxu0 %v478_v3 }
  0x20   : > { %1129 = vmatmul.msk.f32.vlgmr.msra.gmra.mxu0 %vm486_vm0, %v1453_v4 }
  0x9d   : > { %v507_v6 = vpop.f32.mrf.mxu0 }
  0x9e   : > { %v1460_v7 = vadd.f32 %v1204_v5, %v507_v6 }
  0xa0   : > { %615 = vrot.lane.b32.xlu2 %v1460_v7, %s1300_s15  ;;  %519 = vrot.lane.b32.xlu0 %v1460_v7, %s1301_s22  ;;  %s1307_s15 = smov 64   ;;  %s1308_s22 = smov 80  }
  0xa8   : > { %613 = vrot.lane.b32.xlu2 %v1460_v7, %s1302_s19  ;;  %s1309_s19 = smov 72  }
  0xfa   : > { %v616_v26 = vpop.permute.xlu2 %615 }
 0x102   : > { %v614_v29 = vpop.permute.xlu2 %613 }
 0x112   : > { %v520_v8 = vpop.permute.xlu0 %519 }
 0x113   : > { %1130 = vmatpush.xpose.msk.msrb.mxu0 %vm521_vm1, %v520_v8 }
 0x116   : > { %1131 = vmatmul.msk.f32.vlgmr.msrb.gmra.mxu0 %vm521_vm1, %v1460_v7 }
 0x193   : > { %v543_v13 = vpop.f32.mrf.mxu0 }
 0x194   : > { %v546_v14 = vmul.f32 0.35355338, %v543_v13 }
 0x196   : > { %v550_v15 = vadd.f32 %v1471_v12, %v546_v14 }
 0x198   : > { %v551_v16 = vsel %vm521_vm1, %v550_v15, -inf }
 0x199   : > { %552 = vmax.xlane.f32.xlu0 %v551_v16 }
 0x1ad   : > { %654 = vrot.lane.b32.xlu0 %v1460_v7, %s1304_s25  ;;  %s1311_s25 = smov 40  }
 0x1b5   : > { %705 = vrot.lane.b32.xlu0 %v1460_v7, %s1305_s26 }
 0x1bd   : > { %797 = vrot.lane.b32.xlu0 %v1460_v7, %s1306_s21  ;;  %s1050_s21 = scalar_lea.hbm %s1635_s14, %s1149_s24 }
 0x1be   : > { %s1054_s0 = sshll.u32 %s1050_s21, 4  ;;  %s1055_s0 = int_to_ptr.hbm [resolvable:$true] %s1054_s0 }
 0x20c   : > { %v553_v18 = vpop.xlane.xlu0 %552 }
 0x20d   : > { %v554_v19 = vsub.f32 %v550_v15, %v553_v18  ;;  %v1205_v18 = vld [vmem:[%s1626_s5] ss:$0 sm:$0xff] }
 0x20f   : > { %v555_v20 = vmul.f32 1.442695, %v554_v19 }
 0x211   : > { %1212 = vpow2.f32 %v555_v20 }
 0x217   : > { %v1213_v21 = vpop.eup %1212 }
 0x218   : > { %v557_v22 = vsel %vm521_vm1, %v1213_v21, 0.0 }
 0x219   : > { %558 = vadd.xlane.f32.xlu1 %v557_v22 }
 0x21f   : > { %v655_v23 = vpop.permute.xlu0 %654 }
 0x220   : > { %675 = vmatpush.msrb.mxu3 %v655_v23 }
 0x227   : > { %v706_v40 = vpop.permute.xlu0 %705 }
 0x22f   : > { %v798_v58 = vpop.permute.xlu0 %797 }
 0x232   : > { %562 = vrot.lane.b32.xlu1 %v1460_v7, %s1307_s15 }
 0x28c   : > { %v559_v24 = vpop.xlane.xlu1 %558 }
 0x28d   : > { %1214 = vrcp.f32 %v559_v24 }
 0x293   : > { %v1215_v25 = vpop.eup %1214 }
 0x294   : > { %v561_v28 = vmul.f32 %v1215_v25, %v1213_v21 }
 0x2a4   : > { %v563_v27 = vpop.permute.xlu1 %562 }
 0x2a5   : > { %583 = vmatpush.msra.mxu2 %v563_v27  ;;  %v1312_v27 = vmov 32.0  }
 0x2a6   : > { %1132 = vmatmul.msk.f32.vlgmr.msra.gmra.mxu2 %vm521_vm1, %v561_v28 }
 0x2a7   : > { %1134 = vmatpush.xpose.msk.msrb.mxu2 %vm521_vm1, %v616_v26 }
 0x2ae   : > { %1135 = vmatmul.msk.f32.vlgmr.msrb.gmra.mxu2 %vm521_vm1, %v614_v29 }
 0x329   : > { %v585_v30 = vpop.f32.mrf.mxu2 }
 0x32a   : > { %1133 = vmatmul.msk.f32.vlgmr.msra.gmra.mxu3 %vm521_vm1, %v585_v30 }
 0x32b   : > { %791 = vmatpush.msra.mxu3 %v772_v11 }
 0x331   : > { %v638_v31 = vpop.f32.mrf.mxu2 }
 0x332   : > { %v641_v32 = vmul.f32 0.35355338, %v638_v31 }
 0x334   : > { %v642_v33 = vadd.f32 %v641_v32, %v1471_v12 }
 0x336   : > { %v643_v34 = vsel %vm521_vm1, %v642_v33, -inf }
 0x337   : > { %644 = vmax.xlane.f32.xlu2 %v643_v34 }
 0x34f   : > { %707 = vrot.lane.b32.xlu2 %v1460_v7, %s1308_s22  ;;  %s467_s22 = sand.u32 1, %s1290_s30  }
 0x350   : > { %s1040_s18 = scalar_lea.sflag [#allocation3], %s467_s22 }
 0x3aa   : > { %v645_v35 = vpop.xlane.xlu2 %644 }
 0x3ab   : > { %v646_v36 = vsub.f32 %v642_v33, %v645_v35 }
 0x3ad   : > { %v647_v37 = vmul.f32 1.442695, %v646_v36  ;;  %v609_v53 = vpop.f32.mrf.mxu3 }
 0x3ae   : > { %v612_v19 = vadd.f32 %v1205_v18, %v609_v53 }
 0x3af   : > { %1216 = vpow2.f32 %v647_v37 }
 0x3b2   : > { %v708_v38 = vpop.permute.xlu2 %707 }
 0x3b3   : > { %1138 = vmatpush.xpose.msk.msra.mxu0 %vm521_vm1, %v708_v38  ;;  %v932_v38 = vld [vmem:[%s1629_s8 + $0x18] sm:$0xff] }
 0x3b5   : > { %v1217_v39 = vpop.eup %1216 }
 0x3b6   : > { %1139 = vmatmul.msk.f32.vlgmr.msra.gmra.mxu0 %vm521_vm1, %v706_v40  ;;  %v649_v41 = vsel %vm521_vm1, %v1217_v39, 0.0  ;;  %v930_v40 = vld [vmem:[%s1629_s8 + $0x8] sm:$0xff] }
 0x3b7   : > { %650 = vadd.xlane.f32.xlu1 %v649_v41  ;;  %v929_v41 = vld [vmem:[%s1629_s8] sm:$0xff] }
 0x3d0   : > { %799 = vrot.lane.b32.xlu1 %v1460_v7, %s1309_s19  ;;  %s1127_s19 = sshll.u32 %s467_s22, 3 }
 0x3d1   : > { %s469_s15 = scalar_lea.vmem [#allocation2], %s1127_s19  ;;  %s1256_s19 = scalar_lea.hbm %s1635_s14, 16 }
 0x3d2   : > { %s1052_s17 = sshll.u32 %s469_s15, 4  ;;  %s1053_s17 = int_to_ptr.vmem [resolvable:$true] %s1052_s17 }
 0x42a   : > { %v651_v43 = vpop.xlane.xlu1 %650 }
 0x42b   : > { %1218 = vrcp.f32 %v651_v43 }
 0x431   : > { %v1219_v44 = vpop.eup %1218 }
 0x432   : > { %v653_v45 = vmul.f32 %v1219_v44, %v1217_v39  ;;  %v931_v39 = vld [vmem:[%s1629_s8 + $0x10] sm:$0xff] }
 0x433   : > { %v730_v46 = vpop.f32.mrf.mxu0 }
 0x434   : > { %v733_v47 = vmul.f32 0.35355338, %v730_v46  ;;  %1136 = vmatmul.msk.f32.vlgmr.msrb.gmra.mxu3 %vm521_vm1, %v653_v45 }
 0x435   : > { %952 = vmatpush.msrb.mxu3 %v932_v38 }
 0x436   : > { %v734_v48 = vadd.f32 %v733_v47, %v1471_v12 }
 0x437   : > { %953 = vmatpush.msrb.mxu3 %v931_v39 }
 0x438   : > { %v735_v49 = vsel %vm521_vm1, %v734_v48, -inf }
 0x439   : > { %736 = vmax.xlane.f32.xlu2 %v735_v49  ;;  %954 = vmatpush.msrb.mxu3 %v930_v40 }
 0x43b   : > { %955 = vmatpush.msrb.mxu3 %v929_v41 }
 0x442   : > { %v800_v50 = vpop.permute.xlu1 %799 }
 0x443   : > { %1142 = vmatpush.xpose.msk.msrb.mxu1 %vm521_vm1, %v800_v50 }
 0x4ac   : > { %v737_v51 = vpop.xlane.xlu2 %736 }
 0x4ad   : > { %v738_v52 = vsub.f32 %v734_v48, %v737_v51  ;;  %v1206_v51 = vld [vmem:[%s1627_s6] ss:$0 sm:$0xff] }
 0x4af   : > { %v739_v54 = vmul.f32 1.442695, %v738_v52 }
 0x4b1   : > { %1220 = vpow2.f32 %v739_v54  ;;  %v1207_v54 = vld [vmem:[%s1628_s7] ss:$0 sm:$0xff] }
 0x4b7   : > { %v1221_v55 = vpop.eup %1220  ;;  %v677_v56 = vpop.f32.mrf.mxu3 }
 0x4b8   : > { %1137 = vmatmul.msk.f32.vlgmr.msra.gmra.mxu1 %vm521_vm1, %v677_v56  ;;  %v741_v57 = vsel %vm521_vm1, %v1221_v55, 0.0 }
 0x4b9   : > { %742 = vadd.xlane.f32.xlu1 %v741_v57  ;;  %v976_v57 = vld [vmem:[%s1631_s10 + $0x38] sm:$0xff] }
 0x4ba   : > { %993 = vmatpush.msra.mxu1 %v976_v57 }
 0x4c0   : > { %1143 = vmatmul.msk.f32.vlgmr.msrb.gmra.mxu1 %vm521_vm1, %v798_v58  ;;  %v975_v58 = vld [vmem:[%s1631_s10 + $0x30] sm:$0xff] }
 0x4c1   : > { %994 = vmatpush.msra.mxu1 %v975_v58 }
 0x52c   : > { %v743_v3 = vpop.xlane.xlu1 %742 }
 0x535   : > { %v701_v59 = vpop.f32.mrf.mxu1 }
 0x536   : > { %v704_v21 = vadd.f32 %v701_v59, %v612_v19  ;;  %v974_v59 = vld [vmem:[%s1631_s10 + $0x28] sm:$0xff] }
 0x537   : > { %995 = vmatpush.msra.mxu1 %v974_v59 }
 0x53d   : > { %v822_v60 = vpop.f32.mrf.mxu1 }
 0x53e   : > { %v825_v61 = vmul.f32 0.35355338, %v822_v60  ;;  %v973_v60 = vld [vmem:[%s1631_s10 + $0x20] sm:$0xff] }
 0x53f   : > { %996 = vmatpush.msra.mxu1 %v973_v60 }
 0x540   : > { %v826_v62 = vadd.f32 %v825_v61, %v1471_v12  ;;  %v972_v61 = vld [vmem:[%s1631_s10 + $0x18] sm:$0xff] }
 0x541   : > { %997 = vmatpush.msra.mxu1 %v972_v61 }
 0x542   : > { %v827_v63 = vsel %vm521_vm1, %v826_v62, -inf }
 0x543   : > { %828 = vmax.xlane.f32.xlu0 %v827_v63  ;;  %v970_v63 = vld [vmem:[%s1631_s10 + $0x8] sm:$0xff] }
 0x557   : > { %746 = vrot.lane.b32.xlu0 %v1460_v7, %s1310_s20  ;;  %s1250_s20 = sshra.s32 %s1055_s0, 4  ;;  %s1251_s20 = int_to_ptr.hbm [resolvable:$true] %s1250_s20 }
 0x558   : > { %s1252_s24 = scalar_lea.hbm %s1251_s20, 8  ;;  %p1257_p0 = scmp.lt.s32.totalorder %s1251_s20, %s1635_s14 }
 0x559   : > { %p1253_p11 = scmp.ne.s32.totalorder %s1251_s20, %s1252_s24  ;;  %p1258_p1 = scmp.lt.s32.totalorder %s1256_s19, %s1252_s24 }
 0x55b   : > { %p1254_p12 = pnand %p1253_p11, %p1426_p5  ;;  %p1259_p2 = por %p1258_p1, %p1257_p0 }
 0x55d   : > { %p1255_p13 = pneg %p1254_p12 }
 0x55f   : > { %p1260_p3 = pnand %p1259_p2, %p1255_p13 }
 0x5b6   : > { %v829_v0 = vpop.xlane.xlu0 %828 }
 0x5b7   : > { %v830_v1 = vsub.f32 %v826_v62, %v829_v0  ;;  %v971_v62 = vld [vmem:[%s1631_s10 + $0x10] sm:$0xff]  ;;  %v969_v0 = vld [vmem:[%s1631_s10] sm:$0xff] }
 0x5b8   : > { %998 = vmatpush.msra.mxu1 %v971_v62 }
 0x5b9   : > { %v831_v2 = vmul.f32 1.442695, %v830_v1  ;;  %v1208_v1 = vld [vmem:[%s1630_s9] ss:$0 sm:$0xff] }
 0x5ba   : > { %999 = vmatpush.msra.mxu1 %v970_v63 }
 0x5bb   : > { %1222 = vpow2.f32 %v831_v2 }
 0x5bc   : > { %1224 = vrcp.f32 %v743_v3  ;;  %1000 = vmatpush.msra.mxu1 %v969_v0 }
 0x5c1   : > { %v1223_v5 = vpop.eup %1222 }
 0x5c2   : > { %v833_v6 = vsel %vm521_vm1, %v1223_v5, 0.0  ;;  %v1225_v8 = vpop.eup %1224 }
 0x5c3   : > { %834 = vadd.xlane.f32.xlu2 %v833_v6  ;;  %v745_v9 = vmul.f32 %v1225_v8, %v1221_v55 }
 0x5c9   : > { %v747_v10 = vpop.permute.xlu0 %746 }
 0x5ca   : > { %767 = vmatpush.msra.mxu2 %v747_v10 }
 0x5cb   : > { %1140 = vmatmul.msk.f32.vlgmr.msra.gmra.mxu2 %vm521_vm1, %v745_v9 }
 0x5db   : > { %838 = vrot.lane.b32.xlu2 %v1460_v7, %s1311_s25  ;;  %v864_v7 = vld [vmem:[%s1625_s4 + $0x18] sm:$0xff] }
 0x5dc   : > { %883 = vmatpush.msrb.mxu2 %v864_v7 }
 0x636   : > { %v835_v12 = vpop.xlane.xlu2 %834 }
 0x637   : > { %1226 = vrcp.f32 %v835_v12 }
 0x638   : > { %1228 = vrcp.f32 %v1312_v27 }
 0x63d   : > { %v1227_v13 = vpop.eup %1226 }
 0x63e   : > { %v837_v14 = vmul.f32 %v1227_v13, %v1223_v5  ;;  %v839_v15 = vpop.permute.xlu2 %838  ;;  %v1229_v28 = vpop.eup %1228 }
 0x63f   : > { %859 = vmatpush.msrb.mxu0 %v839_v15  ;;  %v896_v29 = vmul.f32 32.0, %v1229_v28  ;;  %vm900_vm3 = vweird.f32 %v1229_v28  ;;  %v1209_v15 = vld [vmem:[%s1632_s11] ss:$0 sm:$0xff] }
 0x640   : > { %1144 = vmatmul.msk.f32.vlgmr.msrb.gmra.mxu0 %vm521_vm1, %v837_v14 }
 0x641   : > { %v897_v30 = vsub.f32 1.0, %v896_v29 }
 0x643   : > { %v898_v31 = vmul.f32 %v1229_v28, %v897_v30 }
 0x645   : > { %v899_v32 = vadd.f32 %v1229_v28, %v898_v31 }
 0x647   : > { %v1524_v33 = vsel %vm900_vm3, %v1229_v28, %v899_v32 }
 0x64e   : > { %v769_v16 = vpop.f32.mrf.mxu2 }
 0x64f   : > { %1141 = vmatmul.msk.f32.vlgmr.msra.gmra.mxu3 %vm521_vm1, %v769_v16 }
 0x6bd   : > { %v861_v17 = vpop.f32.mrf.mxu0 }
 0x6be   : > { %1145 = vmatmul.msk.f32.vlgmr.msrb.gmra.mxu2 %vm521_vm1, %v861_v17 }
 0x6d2   : > { %v793_v20 = vpop.f32.mrf.mxu3 }
 0x6d3   : > { %v796_v22 = vadd.f32 %v793_v20, %v704_v21 }
 0x741   : > { %v885_v23 = vpop.f32.mrf.mxu2 }
 0x742   : > { %v888_v24 = vadd.f32 %v885_v23, %v796_v22 }
 0x744   : > { %v889_v25 = vadd.f32 %v888_v24, %v1453_v4 }
 0x746   : > { %v892_v26 = vsel %vm486_vm0, %v889_v25, 0.0 }
 0x747   : > { %893 = vadd.xlane.f32.xlu1 %v892_v26 }
 0x7ba   : > { %v894_v34 = vpop.xlane.xlu1 %893 }
 0x7bb   : > { %v902_v35 = vmul.f32 %v1524_v33, %v894_v34  ;;  %v1210_v34 = vld [vmem:[%s1633_s12] ss:$0 sm:$0xff] }
 0x7bd   : > { %v903_v36 = vsub.f32 %v889_v25, %v902_v35 }
 0x7bf   : > { %v904_v37 = vmul.f32 %v903_v36, %v903_v36 }
 0x7c1   : > { %v905_v4 = vsel %vm486_vm0, %v904_v37, 0.0 }
 0x7c2   : > { %906 = vadd.xlane.f32.xlu0 %v905_v4 }
 0x835   : > { %v907_v42 = vpop.xlane.xlu0 %906 }
 0x836   : > { %v908_v43 = vmul.f32 %v907_v42, %v1524_v33 }
 0x838   : > { %v909_v44 = vadd.f32 1e-12, %v908_v43 }
 0x83a   : > { %1230 = vrsqrt.f32 %v909_v44  ;;  %vm916_vm5 = vweird.f32 %v909_v44 }
 0x840   : > { %v1231_v45 = vpop.eup %1230 }
 0x841   : > { %v911_v46 = vmul.f32 %v1231_v45, %v909_v44  ;;  %vm917_vm4 = vweird.f32 %v1231_v45 }
 0x842   : > { %vm918_vm6 = vmor %vm916_vm5, %vm917_vm4 }
 0x843   : > { %v912_v47 = vmul.f32 %v1231_v45, %v911_v46 }
 0x845   : > { %v913_v48 = vmul.f32 0.5, %v912_v47 }
 0x847   : > { %v914_v49 = vsub.f32 1.5, %v913_v48 }
 0x849   : > { %v915_v50 = vmul.f32 %v1231_v45, %v914_v49 }
 0x84b   : > { %v919_v52 = vsel %vm918_vm6, %v1231_v45, %v915_v50 }
 0x84c   : > { %v920_v53 = vmul.f32 %v919_v52, %v903_v36  ;;  %v1211_v36 = vld [vmem:[%s1634_s13] ss:$0 sm:$0xff] }
 0x84e   : > { %v924_v55 = vmul.f32 %v1206_v51, %v920_v53 }
 0x850   : > { %v928_v56 = vadd.f32 %v1207_v54, %v924_v55 }
 0x852   : > { %1146 = vmatmul.msk.f32.vlgmr.msrb.gmra.mxu3 %vm486_vm0, %v928_v56 }
 0x8d5   : > { %v957_v2 = vpop.f32.mrf.mxu3 }
 0x8d6   : > { %v958_v3 = vadd.f32 %v1208_v1, %v957_v2 }
 0x8d8   : > { %v961_v5 = vmul.f32 0.044715, %v958_v3  ;;  %v960_v12 = vmul.f32 0.5, %v958_v3 }
 0x8da   : > { %v962_v6 = vmul.f32 %v961_v5, %v958_v3 }
 0x8dc   : > { %v963_v8 = vmul.f32 %v962_v6, %v958_v3 }
 0x8de   : > { %v964_v9 = vadd.f32 %v963_v8, %v958_v3 }
 0x8e0   : > { %v965_v10 = vmul.f32 0.7978846, %v964_v9 }
 0x8e2   : > { %1232 = vtanh.f32 %v965_v10 }
 0x8e8   : > { %v1233_v11 = vpop.eup %1232 }
 0x8e9   : > { %v967_v13 = vadd.f32 1.0, %v1233_v11 }
 0x8eb   : > { %v968_v14 = vmul.f32 %v967_v13, %v960_v12 }
 0x8ed   : > { %1147 = vmatmul.msk.f32.vlgmr.msra.gmra.mxu1 %vm981_vm7, %v968_v14 }
 0x96a   : > { %v1002_v16 = vpop.f32.mrf.mxu1 }
 0x96b   : > { %v1003_v7 = vadd.f32 %v1209_v15, %v1002_v16 }
 0x96d   : > { %v1005_v17 = vadd.f32 %v1003_v7, %v928_v56 }
 0x96f   : > { %v1008_v18 = vsel %vm486_vm0, %v1005_v17, 0.0 }
 0x970   : > { %1009 = vadd.xlane.f32.xlu1 %v1008_v18 }
 0x9e3   : > { %v1010_v19 = vpop.xlane.xlu1 %1009 }
 0x9e4   : > { %v1011_v20 = vmul.f32 %v1010_v19, %v1524_v33 }
 0x9e6   : > { %v1012_v21 = vsub.f32 %v1005_v17, %v1011_v20 }
 0x9e8   : > { %v1013_v22 = vmul.f32 %v1012_v21, %v1012_v21 }
 0x9ea   : > { %v1014_v23 = vsel %vm486_vm0, %v1013_v22, 0.0 }
 0x9eb   : > { %1015 = vadd.xlane.f32.xlu2 %v1014_v23 }
 0xa5e   : > { %v1016_v24 = vpop.xlane.xlu2 %1015 }
 0xa5f   : > { %v1017_v25 = vmul.f32 %v1016_v24, %v1524_v33 }
 0xa61   : > { %v1018_v26 = vadd.f32 1e-12, %v1017_v25 }
 0xa63   : > { %1234 = vrsqrt.f32 %v1018_v26  ;;  %vm1025_vm9 = vweird.f32 %v1018_v26 }
 0xa69   : > { %v1235_v27 = vpop.eup %1234 }
 0xa6a   : > { %v1020_v28 = vmul.f32 %v1235_v27, %v1018_v26  ;;  %vm1026_vm8 = vweird.f32 %v1235_v27 }
 0xa6b   : > { %vm1027_vm10 = vmor %vm1025_vm9, %vm1026_vm8 }
 0xa6c   : > { %v1021_v29 = vmul.f32 %v1235_v27, %v1020_v28 }
 0xa6e   : > { %v1022_v30 = vmul.f32 0.5, %v1021_v29 }
 0xa70   : > { %v1023_v31 = vsub.f32 1.5, %v1022_v30 }
 0xa72   : > { %v1024_v32 = vmul.f32 %v1235_v27, %v1023_v31 }
 0xa74   : > { %v1028_v33 = vsel %vm1027_vm10, %v1235_v27, %v1024_v32 }
 0xa75   : > { %v1029_v35 = vmul.f32 %v1028_v33, %v1012_v21 }
 0xa77   : > { %v1033_v37 = vmul.f32 %v1210_v34, %v1029_v35 }
 0xa79   : > { %v1037_v4 = vadd.f32 %v1211_v36, %v1033_v37 }
 0xa7b   : > { %1038 = vst.msk [vmem:[%s469_s15] sm:$0xff] %vm486_vm0, %v1037_v4 }
 0xa7c   : > { %1263 = shalt.err (!%p1260_p3)
}
 0xa7d   : > { %1152 = dma.vmem_to_hbm [thread:$0]  (%p1426_p5), %s1053_s17, 128, %s1055_s0, %s1040_s18  }
 0xa7e PF: > { %p1158_p4 = scmp.ge.s32.totalorder %s1298_s16, 2  ;;  %s1066_s28 = sand.u32 1, %s1286_s29  }
 0xa7f   : > { %s1067_s15 = scalar_lea.sflag [#allocation3], %s1066_s28 }
 0xa80   : > { %p1155_p7 = pnand %p1158_p4, %p1430_p6 }
 0xa82   : > { %p1156_p8 = pneg %p1155_p7 }
 0xa84   : > { %1281 = dma.done.wait (%p1156_p8), %s1067_s15, 128  }
 0xa85   : > { %1283 = vsyncadd (%p1156_p8), %s1067_s15, 4294967168  ;;  %s1649_s16 = sld [smem:[#allocation6_spill]]  ;;  %s1652_s29 = smov %s1290_s30 }
 0xa86   : > { %s1650_s20 = sld [smem:[#allocation5_spill]] }
 0xa87   : > { %s1651_s15 = sld [smem:[#allocation7_spill]] }
 0xa8b   : > { %p24_p9 = scmp.ge.s32.totalorder %s1649_s16, 4  }
 0xa8c   : > { %s1653_s30 = smov %s1650_s20 }
 0xa8d   :  { %26 = sbr.rel (!%p24_p9) target bundleno = 5 (0x5), region = 114 }
 0xa92   :  { %1073 = vsyncpa [#allocation3], 1 }
 0xa93   :  { %1075 = vsyncpa [#allocation3 + $0x1], 1 }

</bundles_post_ra>
